<compile_context>
chip_gen: v7x
topology: tpu7x:2x2x1
jax: 0.10.0
libtpu: 0.0.40
codegen_flags: <defaults>
</compile_context>

<pallas_src>
import jax
import jax.numpy as jnp
from jax import lax
from jax.experimental import pallas as pl
from jax.experimental.pallas import tpu as pltpu


def position_pair_kernel(in1_ref, in2_ref, w1_ref, w2_ref, bvec_ref,
                         w3_ref, b3_ref, myx_ref, e_ref, o_ref, xcols_ref):
    # in1_ref  : (Cin, sb*H*W)   input1, samples flattened along lanes
    # in2_ref  : (Cin, W, sb*H)  input2 pre-transposed: [ci, x, s*H + y]
    # w1_ref   : (Cin, 1)        conv_1 weights, BN1 scale folded in
    # w2_ref   : (Cin, 1, 1)     conv_2 weights, BN2 scale folded in
    # bvec_ref : (2,) SMEM       [b1, b2] folded BN biases
    # w3_ref   : (Cout, 9*H)     conv_3 weights, col = (ky*3+kx)*H + ci,
    #                            0.5 (of x3) and BN3 scale folded in
    # b3_ref   : (Cout, 1)       folded BN3 bias
    # myx_ref  : (9, 1, sb*H*W)  combined (y, x) zero-pad masks per 3x3 tap
    # e_ref    : (sb*H, sb*H*W)  block-diagonal one-hot y-expansion matrix
    # o_ref    : (Cout, sb*H*W)
    # xcols_ref: (9*H, sb*H*W)   VMEM scratch for the im2col tap matrix
    _, W, _ = in2_ref.shape
    H = W                      # module requires h == w
    L = in1_ref.shape[1]       # sb * H * W

    b1 = bvec_ref[0]
    b2 = bvec_ref[1]

    # conv_1 (1x1, BN1 scale folded) + bias + ReLU -> (1, L), lane-dense.
    a1 = jnp.sum(w1_ref[...] * in1_ref[...], axis=0, keepdims=True)
    a1 = jnp.maximum(a1 + b1, 0.0)

    # conv_2 (1x1, BN2 scale folded) + bias + ReLU; already (x = ci, s*H + y).
    a2t = jnp.sum(w2_ref[...] * in2_ref[...], axis=0)            # (W, sb*H)
    a2t = jnp.maximum(a2t + b2, 0.0)

    # rep0[ci, s*HW + p] = a2[s, y(p), ci]  — one MXU dot for the whole block.
    rep0 = jnp.dot(a2t, e_ref[...], preferred_element_type=jnp.float32)  # (W, L)

    myx = myx_ref[...]                                           # (9, 1, L)

    # im2col: xcols[(ky*3+kx)*H + ci, s*HW + p]
    #       = mask * (a1[s, y+dy, x+dx] + a2[s, y+dy, ci])
    # Rolls wrap across row/sample boundaries only where the mask is 0.
    for ky in range(3):
        dy = ky - 1
        rep = rep0 if dy == 0 else pltpu.roll(rep0, (-dy * W) % L, axis=1)
        for kx in range(3):
            k = ky * 3 + kx
            sh = dy * W + (kx - 1)
            a1t = a1 if sh == 0 else pltpu.roll(a1, (-sh) % L, axis=1)
            xcols_ref[pl.ds(k * H, H), :] = myx[k] * (a1t + rep)

    # conv_3 (+ BN3 scale) as one MXU contraction over K = 9*H for all samples.
    r = jnp.dot(w3_ref[...], xcols_ref[...], preferred_element_type=jnp.float32)
    o_ref[...] = jnp.maximum(r + b3_ref[...], 0.0).astype(o_ref.dtype)


def _fold_bn(gamma, beta, mean, var, eps=1e-5):
    scale = gamma / jnp.sqrt(var + eps)
    return scale, beta - mean * scale


def position_pair_forward(input1, input2, params, *, samples_per_block=None):
    B, Cin, H, W = input1.shape
    assert H == W, "position_pair requires square spatial maps (h == w == spatial)"
    HW = H * W
    w3 = params["w3"]                                    # (Cout, H, 3, 3)
    Cout = w3.shape[0]
    assert w3.shape[1] == H, "conv_3 in-channels must equal the spatial size"

    # Block-size heuristic: single grid step for small B (serial grid on
    # v5e/v6e); cap at 8 samples per step for large B (bounds VMEM, keeps the
    # grid multi-step for v7x's two TensorCores).
    if samples_per_block is None:
        if B <= 8:
            sb = B
        elif B % 8 == 0:
            sb = 8
        else:
            sb = B
    else:
        sb = samples_per_block
    assert B % sb == 0, "samples_per_block must divide the batch"
    assert sb == B or (sb * H) % 128 == 0, \
        "samples_per_block must be B or give a 128-multiple lane block"
    nblk = B // sb
    L = sb * HW

    s1, b1 = _fold_bn(params["bn1_gamma"], params["bn1_beta"],
                      params["bn1_mean"], params["bn1_var"])
    s2, b2 = _fold_bn(params["bn2_gamma"], params["bn2_beta"],
                      params["bn2_mean"], params["bn2_var"])
    s3, b3 = _fold_bn(params["bn3_gamma"], params["bn3_beta"],
                      params["bn3_mean"], params["bn3_var"])

    # Fold BN scales into the conv weights (wrapper-side, free).
    w1r = (params["w1"] * s1).reshape(Cin, 1).astype(jnp.float32)
    w2r = (params["w2"] * s2).reshape(Cin, 1, 1).astype(jnp.float32)
    bvec = jnp.concatenate([b1, b2]).astype(jnp.float32)                  # (2,)
    # conv_3 weights -> (Cout, 9*H), column (ky*3+kx)*H + ci; 0.5 and s3 folded.
    w3row = (0.5 * s3[:, None] *
             jnp.transpose(w3, (0, 2, 3, 1)).reshape(Cout, 9 * H)).astype(jnp.float32)
    b3r = b3.reshape(Cout, 1).astype(jnp.float32)

    # Hoisted constants: combined zero-pad masks per tap and the block-diagonal
    # one-hot y-expansion matrix (both tiled for the sb samples of one block).
    p = jnp.arange(HW, dtype=jnp.int32)
    yi = p // W
    xi = p % W
    myx_rows = []
    for ky in range(3):
        dy = ky - 1
        ym = ((yi + dy) >= 0) & ((yi + dy) < H)
        for kx in range(3):
            dx = kx - 1
            xm = ((xi + dx) >= 0) & ((xi + dx) < W)
            myx_rows.append((ym & xm).astype(jnp.float32))
    myx = jnp.tile(jnp.stack(myx_rows), (1, sb)).reshape(9, 1, L)
    e0 = (jnp.arange(H, dtype=jnp.int32)[:, None] == yi[None, :]).astype(jnp.float32)
    e_big = jnp.kron(jnp.eye(sb, dtype=jnp.float32), e0)                  # (sb*H, sb*HW)

    # Lane-dense input layouts (wrapper-side relayout, cheap at these sizes).
    in1l = input1.astype(jnp.float32).transpose(1, 0, 2, 3).reshape(Cin, B * HW)
    in2c = input2.astype(jnp.float32).transpose(1, 3, 0, 2).reshape(Cin, W, B * H)

    out_flat = pl.pallas_call(
        position_pair_kernel,
        out_shape=jax.ShapeDtypeStruct((Cout, B * HW), jnp.float32),
        grid=(nblk,),
        in_specs=[
            pl.BlockSpec((Cin, L), lambda b: (0, b)),
            pl.BlockSpec((Cin, W, sb * H), lambda b: (0, 0, b)),
            pl.BlockSpec((Cin, 1), lambda b: (0, 0)),
            pl.BlockSpec((Cin, 1, 1), lambda b: (0, 0, 0)),
            pl.BlockSpec(memory_space=pltpu.MemorySpace.SMEM),
            pl.BlockSpec((Cout, 9 * H), lambda b: (0, 0)),
            pl.BlockSpec((Cout, 1), lambda b: (0, 0)),
            pl.BlockSpec((9, 1, L), lambda b: (0, 0, 0)),
            pl.BlockSpec((sb * H, L), lambda b: (0, 0)),
        ],
        out_specs=pl.BlockSpec((Cout, L), lambda b: (0, b)),
        scratch_shapes=[pltpu.VMEM((9 * H, L), jnp.float32)],
        compiler_params=pltpu.CompilerParams(dimension_semantics=("parallel",)),
    )(in1l, in2c, w1r, w2r, bvec, w3row, b3r, myx, e_big)

    return out_flat.reshape(Cout, B, H, W).transpose(1, 0, 2, 3)


def position_pair_reference(input1, input2, params):
    """Pure-JAX reference (same eval-mode BN semantics) for validation."""
    hp = lax.Precision.HIGHEST
    s1, b1 = _fold_bn(params["bn1_gamma"], params["bn1_beta"],
                      params["bn1_mean"], params["bn1_var"])
    s2, b2 = _fold_bn(params["bn2_gamma"], params["bn2_beta"],
                      params["bn2_mean"], params["bn2_var"])
    s3, b3 = _fold_bn(params["bn3_gamma"], params["bn3_beta"],
                      params["bn3_mean"], params["bn3_var"])

    a1 = jnp.maximum(jnp.einsum("c,bchw->bhw", params["w1"], input1,
                                precision=hp) * s1 + b1, 0.0)
    a2 = jnp.maximum(jnp.einsum("c,bchw->bhw", params["w2"], input2,
                                precision=hp) * s2 + b2, 0.0)
    # x3[b, i, y, x] = 0.5 * (a1[b, y, x] + a2[b, y, i])
    x3 = 0.5 * (a1[:, None, :, :] + jnp.swapaxes(a2, 1, 2)[:, :, :, None])
    y = lax.conv_general_dilated(x3, params["w3"], window_strides=(1, 1),
                                 padding=((1, 1), (1, 1)),
                                 dimension_numbers=("NCHW", "OIHW", "NCHW"),
                                 precision=hp)
    y = jnp.maximum(y * s3[None, :, None, None] + b3[None, :, None, None], 0.0)
    return y


if __name__ == "__main__":
    # Shapes consistent with the module: channel=4, spatial=16 (h == w == 16), batch=2.
    B, C, H = 2, 4, 16
    W = H
    ks = jax.random.split(jax.random.PRNGKey(0), 18)

    input1 = jax.random.normal(ks[0], (B, C, H, W), jnp.float32)
    input2 = jax.random.normal(ks[1], (B, C, H, W), jnp.float32)

    params = {
        # conv_1 / conv_2: Conv2d(channel, 1, k=1, bias=False) -> weight (1, C, 1, 1) ~ (C,)
        "w1": 0.3 * jax.random.normal(ks[2], (C,), jnp.float32),
        "w2": 0.3 * jax.random.normal(ks[3], (C,), jnp.float32),
        # conv_3: Conv2d(spatial, channel, k=3, pad=1, bias=False) -> (C, H, 3, 3)
        "w3": 0.2 * jax.random.normal(ks[4], (C, H, 3, 3), jnp.float32),
        # BN params (deterministic "running" stats, eval mode)
        "bn1_gamma": 1.0 + 0.1 * jax.random.normal(ks[5], (1,), jnp.float32),
        "bn1_beta": 0.1 * jax.random.normal(ks[6], (1,), jnp.float32),
        "bn1_mean": 0.1 * jax.random.normal(ks[7], (1,), jnp.float32),
        "bn1_var": 0.5 + jax.random.uniform(ks[8], (1,), jnp.float32),
        "bn2_gamma": 1.0 + 0.1 * jax.random.normal(ks[9], (1,), jnp.float32),
        "bn2_beta": 0.1 * jax.random.normal(ks[10], (1,), jnp.float32),
        "bn2_mean": 0.1 * jax.random.normal(ks[11], (1,), jnp.float32),
        "bn2_var": 0.5 + jax.random.uniform(ks[12], (1,), jnp.float32),
        "bn3_gamma": 1.0 + 0.1 * jax.random.normal(ks[13], (C,), jnp.float32),
        "bn3_beta": 0.1 * jax.random.normal(ks[14], (C,), jnp.float32),
        "bn3_mean": 0.1 * jax.random.normal(ks[15], (C,), jnp.float32),
        "bn3_var": 0.5 + jax.random.uniform(ks[16], (C,), jnp.float32),
    }

    out = jax.block_until_ready(position_pair_forward(input1, input2, params))
    ref = position_pair_reference(input1, input2, params)

    assert out.shape == (B, C, H, W), out.shape
    max_err = float(jnp.max(jnp.abs(out - ref)))
    # Tolerance covers MXU default-precision rounding of the in-kernel dots vs the
    # HIGHEST-precision XLA reference; structural bugs would be O(0.1) or larger.
    if max_err > 1e-2:
        raise AssertionError(f"kernel mismatch vs reference, max abs err = {max_err}")
    print("KERNEL_OK")
</pallas_src>

<mosaic_0001>
module attributes {stable_mosaic.version = 11 : i64} {
  func.func @position_pair_kernel(%arg0: i32, %arg1: memref<4x512xf32, #tpu.memory_space<vmem>>, %arg2: memref<4x16x32xf32, #tpu.memory_space<vmem>>, %arg3: memref<4x1xf32, #tpu.memory_space<vmem>>, %arg4: memref<4x1x1xf32, #tpu.memory_space<vmem>>, %arg5: memref<2xf32, #tpu.memory_space<smem>>, %arg6: memref<4x144xf32, #tpu.memory_space<vmem>>, %arg7: memref<4x1xf32, #tpu.memory_space<vmem>>, %arg8: memref<9x1x512xf32, #tpu.memory_space<vmem>>, %arg9: memref<32x512xf32, #tpu.memory_space<vmem>>, %arg10: memref<4x512xf32, #tpu.memory_space<vmem>>, %arg11: memref<144x512xf32, #tpu.memory_space<vmem>>) attributes {dimension_semantics = [#tpu.dimension_semantics<parallel>], iteration_bounds = array<i64: 1>, scalar_prefetch = 0 : i64, scratch_operands = 1 : i64, tpu.core_type = #tpu.core_type<tc>, window_params = [{transform_indices = @transform_0, window_bounds = array<i64: 4, 512>}, {transform_indices = @transform_1, window_bounds = array<i64: 4, 16, 32>}, {pipeline_mode = #tpu.pipeline_mode<synchronous>, transform_indices = @transform_2, window_bounds = array<i64: 4, 1>}, {pipeline_mode = #tpu.pipeline_mode<synchronous>, transform_indices = @transform_3, window_bounds = array<i64: 4, 1, 1>}, {transform_indices = @transform_4, window_bounds = array<i64: 2>}, {pipeline_mode = #tpu.pipeline_mode<synchronous>, transform_indices = @transform_5, window_bounds = array<i64: 4, 144>}, {pipeline_mode = #tpu.pipeline_mode<synchronous>, transform_indices = @transform_6, window_bounds = array<i64: 4, 1>}, {pipeline_mode = #tpu.pipeline_mode<synchronous>, transform_indices = @transform_7, window_bounds = array<i64: 9, 1, 512>}, {pipeline_mode = #tpu.pipeline_mode<synchronous>, transform_indices = @transform_8, window_bounds = array<i64: 32, 512>}, {transform_indices = @transform_9, window_bounds = array<i64: 4, 512>}]} {
    %c0 = arith.constant 0 : index
    %0 = memref.load %arg5[%c0] : memref<2xf32, #tpu.memory_space<smem>>
    %c1 = arith.constant 1 : index
    %1 = memref.load %arg5[%c1] : memref<2xf32, #tpu.memory_space<smem>>
    %c0_0 = arith.constant 0 : index
    %c0_1 = arith.constant 0 : index
    %2 = vector.load %arg3[%c0_0, %c0_1] : memref<4x1xf32, #tpu.memory_space<vmem>>, vector<4x1xf32>
    %c0_2 = arith.constant 0 : index
    %c0_3 = arith.constant 0 : index
    %3 = vector.load %arg1[%c0_2, %c0_3] : memref<4x512xf32, #tpu.memory_space<vmem>>, vector<4x512xf32>
    %4 = vector.broadcast %2 : vector<4x1xf32> to vector<4x512xf32>
    %5 = arith.mulf %4, %3 : vector<4x512xf32>
    %cst = arith.constant dense<0.000000e+00> : vector<512xf32>
    %6 = vector.multi_reduction <add>, %5, %cst [0] : vector<4x512xf32> to vector<512xf32>
    %7 = vector.shape_cast %6 : vector<512xf32> to vector<1x512xf32>
    %8 = vector.broadcast %0 : f32 to vector<1x512xf32>
    %9 = arith.addf %7, %8 : vector<1x512xf32>
    %cst_4 = arith.constant 0.000000e+00 : f32
    %10 = vector.broadcast %cst_4 : f32 to vector<1x512xf32>
    %11 = arith.maximumf %9, %10 : vector<1x512xf32>
    %c0_5 = arith.constant 0 : index
    %c0_6 = arith.constant 0 : index
    %c0_7 = arith.constant 0 : index
    %12 = vector.load %arg4[%c0_5, %c0_6, %c0_7] : memref<4x1x1xf32, #tpu.memory_space<vmem>>, vector<4x1x1xf32>
    %c0_8 = arith.constant 0 : index
    %c0_9 = arith.constant 0 : index
    %c0_10 = arith.constant 0 : index
    %13 = vector.load %arg2[%c0_8, %c0_9, %c0_10] : memref<4x16x32xf32, #tpu.memory_space<vmem>>, vector<4x16x32xf32>
    %14 = vector.broadcast %12 : vector<4x1x1xf32> to vector<4x16x32xf32>
    %15 = arith.mulf %14, %13 : vector<4x16x32xf32>
    %cst_11 = arith.constant dense<0.000000e+00> : vector<16x32xf32>
    %16 = vector.multi_reduction <add>, %15, %cst_11 [0] : vector<4x16x32xf32> to vector<16x32xf32>
    %17 = vector.broadcast %1 : f32 to vector<16x32xf32>
    %18 = arith.addf %16, %17 : vector<16x32xf32>
    %cst_12 = arith.constant 0.000000e+00 : f32
    %19 = vector.broadcast %cst_12 : f32 to vector<16x32xf32>
    %20 = arith.maximumf %18, %19 : vector<16x32xf32>
    %c0_13 = arith.constant 0 : index
    %c0_14 = arith.constant 0 : index
    %21 = vector.load %arg9[%c0_13, %c0_14] : memref<32x512xf32, #tpu.memory_space<vmem>>, vector<32x512xf32>
    %cst_15 = arith.constant dense<0.000000e+00> : vector<16x512xf32>
    %22 = tpu.matmul %20, %21, %cst_15 {dimension_numbers = #tpu.dot_dimension_numbers<[1], [0], [0], [1], [0, 0, 1, 1], [], []>} : vector<16x32xf32>, vector<32x512xf32>, vector<16x512xf32> -> vector<16x512xf32>
    %c0_16 = arith.constant 0 : index
    %c0_17 = arith.constant 0 : index
    %c0_18 = arith.constant 0 : index
    %23 = vector.load %arg8[%c0_16, %c0_17, %c0_18] : memref<9x1x512xf32, #tpu.memory_space<vmem>>, vector<9x1x512xf32>
    %c16_i32 = arith.constant 16 : i32
    %24 = tpu.dynamic_rotate %22 by %c16_i32 dim 1 : vector<16x512xf32>, i32 -> vector<16x512xf32>
    %c17_i32 = arith.constant 17 : i32
    %25 = tpu.dynamic_rotate %11 by %c17_i32 dim 1 : vector<1x512xf32>, i32 -> vector<1x512xf32>
    %26 = vector.extract_strided_slice %23 {offsets = [0, 0, 0], sizes = [1, 1, 512], strides = [1, 1, 1]} : vector<9x1x512xf32> to vector<1x1x512xf32>
    %27 = vector.shape_cast %26 : vector<1x1x512xf32> to vector<1x512xf32>
    %28 = vector.broadcast %25 : vector<1x512xf32> to vector<16x512xf32>
    %29 = arith.addf %28, %24 : vector<16x512xf32>
    %30 = vector.broadcast %27 : vector<1x512xf32> to vector<16x512xf32>
    %31 = arith.mulf %30, %29 : vector<16x512xf32>
    %c0_19 = arith.constant 0 : index
    %c0_20 = arith.constant 0 : index
    %32 = vector.load %arg11[%c0_19, %c0_20] : memref<144x512xf32, #tpu.memory_space<vmem>>, vector<16x512xf32>
    tpu.vector_store %arg11[%c0_19, %c0_20], %31 {strides = array<i32>} : memref<144x512xf32, #tpu.memory_space<vmem>>, vector<16x512xf32>,
    %c16_i32_21 = arith.constant 16 : i32
    %33 = tpu.dynamic_rotate %11 by %c16_i32_21 dim 1 : vector<1x512xf32>, i32 -> vector<1x512xf32>
    %34 = vector.extract_strided_slice %23 {offsets = [1, 0, 0], sizes = [1, 1, 512], strides = [1, 1, 1]} : vector<9x1x512xf32> to vector<1x1x512xf32>
    %35 = vector.shape_cast %34 : vector<1x1x512xf32> to vector<1x512xf32>
    %36 = vector.broadcast %33 : vector<1x512xf32> to vector<16x512xf32>
    %37 = arith.addf %36, %24 : vector<16x512xf32>
    %38 = vector.broadcast %35 : vector<1x512xf32> to vector<16x512xf32>
    %39 = arith.mulf %38, %37 : vector<16x512xf32>
    %c16 = arith.constant 16 : index
    %c0_22 = arith.constant 0 : index
    %40 = vector.load %arg11[%c16, %c0_22] : memref<144x512xf32, #tpu.memory_space<vmem>>, vector<16x512xf32>
    tpu.vector_store %arg11[%c16, %c0_22], %39 {strides = array<i32>} : memref<144x512xf32, #tpu.memory_space<vmem>>, vector<16x512xf32>,
    %c15_i32 = arith.constant 15 : i32
    %41 = tpu.dynamic_rotate %11 by %c15_i32 dim 1 : vector<1x512xf32>, i32 -> vector<1x512xf32>
    %42 = vector.extract_strided_slice %23 {offsets = [2, 0, 0], sizes = [1, 1, 512], strides = [1, 1, 1]} : vector<9x1x512xf32> to vector<1x1x512xf32>
    %43 = vector.shape_cast %42 : vector<1x1x512xf32> to vector<1x512xf32>
    %44 = vector.broadcast %41 : vector<1x512xf32> to vector<16x512xf32>
    %45 = arith.addf %44, %24 : vector<16x512xf32>
    %46 = vector.broadcast %43 : vector<1x512xf32> to vector<16x512xf32>
    %47 = arith.mulf %46, %45 : vector<16x512xf32>
    %c32 = arith.constant 32 : index
    %c0_23 = arith.constant 0 : index
    %48 = vector.load %arg11[%c32, %c0_23] : memref<144x512xf32, #tpu.memory_space<vmem>>, vector<16x512xf32>
    tpu.vector_store %arg11[%c32, %c0_23], %47 {strides = array<i32>} : memref<144x512xf32, #tpu.memory_space<vmem>>, vector<16x512xf32>,
    %c1_i32 = arith.constant 1 : i32
    %49 = tpu.dynamic_rotate %11 by %c1_i32 dim 1 : vector<1x512xf32>, i32 -> vector<1x512xf32>
    %50 = vector.extract_strided_slice %23 {offsets = [3, 0, 0], sizes = [1, 1, 512], strides = [1, 1, 1]} : vector<9x1x512xf32> to vector<1x1x512xf32>
    %51 = vector.shape_cast %50 : vector<1x1x512xf32> to vector<1x512xf32>
    %52 = vector.broadcast %49 : vector<1x512xf32> to vector<16x512xf32>
    %53 = arith.addf %52, %22 : vector<16x512xf32>
    %54 = vector.broadcast %51 : vector<1x512xf32> to vector<16x512xf32>
    %55 = arith.mulf %54, %53 : vector<16x512xf32>
    %c48 = arith.constant 48 : index
    %c0_24 = arith.constant 0 : index
    %56 = vector.load %arg11[%c48, %c0_24] : memref<144x512xf32, #tpu.memory_space<vmem>>, vector<16x512xf32>
    tpu.vector_store %arg11[%c48, %c0_24], %55 {strides = array<i32>} : memref<144x512xf32, #tpu.memory_space<vmem>>, vector<16x512xf32>,
    %57 = vector.extract_strided_slice %23 {offsets = [4, 0, 0], sizes = [1, 1, 512], strides = [1, 1, 1]} : vector<9x1x512xf32> to vector<1x1x512xf32>
    %58 = vector.shape_cast %57 : vector<1x1x512xf32> to vector<1x512xf32>
    %59 = vector.broadcast %11 : vector<1x512xf32> to vector<16x512xf32>
    %60 = arith.addf %59, %22 : vector<16x512xf32>
    %61 = vector.broadcast %58 : vector<1x512xf32> to vector<16x512xf32>
    %62 = arith.mulf %61, %60 : vector<16x512xf32>
    %c64 = arith.constant 64 : index
    %c0_25 = arith.constant 0 : index
    %63 = vector.load %arg11[%c64, %c0_25] : memref<144x512xf32, #tpu.memory_space<vmem>>, vector<16x512xf32>
    tpu.vector_store %arg11[%c64, %c0_25], %62 {strides = array<i32>} : memref<144x512xf32, #tpu.memory_space<vmem>>, vector<16x512xf32>,
    %c511_i32 = arith.constant 511 : i32
    %64 = tpu.dynamic_rotate %11 by %c511_i32 dim 1 : vector<1x512xf32>, i32 -> vector<1x512xf32>
    %65 = vector.extract_strided_slice %23 {offsets = [5, 0, 0], sizes = [1, 1, 512], strides = [1, 1, 1]} : vector<9x1x512xf32> to vector<1x1x512xf32>
    %66 = vector.shape_cast %65 : vector<1x1x512xf32> to vector<1x512xf32>
    %67 = vector.broadcast %64 : vector<1x512xf32> to vector<16x512xf32>
    %68 = arith.addf %67, %22 : vector<16x512xf32>
    %69 = vector.broadcast %66 : vector<1x512xf32> to vector<16x512xf32>
    %70 = arith.mulf %69, %68 : vector<16x512xf32>
    %c80 = arith.constant 80 : index
    %c0_26 = arith.constant 0 : index
    %71 = vector.load %arg11[%c80, %c0_26] : memref<144x512xf32, #tpu.memory_space<vmem>>, vector<16x512xf32>
    tpu.vector_store %arg11[%c80, %c0_26], %70 {strides = array<i32>} : memref<144x512xf32, #tpu.memory_space<vmem>>, vector<16x512xf32>,
    %c496_i32 = arith.constant 496 : i32
    %72 = tpu.dynamic_rotate %22 by %c496_i32 dim 1 : vector<16x512xf32>, i32 -> vector<16x512xf32>
    %c497_i32 = arith.constant 497 : i32
    %73 = tpu.dynamic_rotate %11 by %c497_i32 dim 1 : vector<1x512xf32>, i32 -> vector<1x512xf32>
    %74 = vector.extract_strided_slice %23 {offsets = [6, 0, 0], sizes = [1, 1, 512], strides = [1, 1, 1]} : vector<9x1x512xf32> to vector<1x1x512xf32>
    %75 = vector.shape_cast %74 : vector<1x1x512xf32> to vector<1x512xf32>
    %76 = vector.broadcast %73 : vector<1x512xf32> to vector<16x512xf32>
    %77 = arith.addf %76, %72 : vector<16x512xf32>
    %78 = vector.broadcast %75 : vector<1x512xf32> to vector<16x512xf32>
    %79 = arith.mulf %78, %77 : vector<16x512xf32>
    %c96 = arith.constant 96 : index
    %c0_27 = arith.constant 0 : index
    %80 = vector.load %arg11[%c96, %c0_27] : memref<144x512xf32, #tpu.memory_space<vmem>>, vector<16x512xf32>
    tpu.vector_store %arg11[%c96, %c0_27], %79 {strides = array<i32>} : memref<144x512xf32, #tpu.memory_space<vmem>>, vector<16x512xf32>,
    %c496_i32_28 = arith.constant 496 : i32
    %81 = tpu.dynamic_rotate %11 by %c496_i32_28 dim 1 : vector<1x512xf32>, i32 -> vector<1x512xf32>
    %82 = vector.extract_strided_slice %23 {offsets = [7, 0, 0], sizes = [1, 1, 512], strides = [1, 1, 1]} : vector<9x1x512xf32> to vector<1x1x512xf32>
    %83 = vector.shape_cast %82 : vector<1x1x512xf32> to vector<1x512xf32>
    %84 = vector.broadcast %81 : vector<1x512xf32> to vector<16x512xf32>
    %85 = arith.addf %84, %72 : vector<16x512xf32>
    %86 = vector.broadcast %83 : vector<1x512xf32> to vector<16x512xf32>
    %87 = arith.mulf %86, %85 : vector<16x512xf32>
    %c112 = arith.constant 112 : index
    %c0_29 = arith.constant 0 : index
    %88 = vector.load %arg11[%c112, %c0_29] : memref<144x512xf32, #tpu.memory_space<vmem>>, vector<16x512xf32>
    tpu.vector_store %arg11[%c112, %c0_29], %87 {strides = array<i32>} : memref<144x512xf32, #tpu.memory_space<vmem>>, vector<16x512xf32>,
    %c495_i32 = arith.constant 495 : i32
    %89 = tpu.dynamic_rotate %11 by %c495_i32 dim 1 : vector<1x512xf32>, i32 -> vector<1x512xf32>
    %90 = vector.extract_strided_slice %23 {offsets = [8, 0, 0], sizes = [1, 1, 512], strides = [1, 1, 1]} : vector<9x1x512xf32> to vector<1x1x512xf32>
    %91 = vector.shape_cast %90 : vector<1x1x512xf32> to vector<1x512xf32>
    %92 = vector.broadcast %89 : vector<1x512xf32> to vector<16x512xf32>
    %93 = arith.addf %92, %72 : vector<16x512xf32>
    %94 = vector.broadcast %91 : vector<1x512xf32> to vector<16x512xf32>
    %95 = arith.mulf %94, %93 : vector<16x512xf32>
    %c128 = arith.constant 128 : index
    %c0_30 = arith.constant 0 : index
    %96 = vector.load %arg11[%c128, %c0_30] : memref<144x512xf32, #tpu.memory_space<vmem>>, vector<16x512xf32>
    tpu.vector_store %arg11[%c128, %c0_30], %95 {strides = array<i32>} : memref<144x512xf32, #tpu.memory_space<vmem>>, vector<16x512xf32>,
    %c0_31 = arith.constant 0 : index
    %c0_32 = arith.constant 0 : index
    %97 = vector.load %arg6[%c0_31, %c0_32] : memref<4x144xf32, #tpu.memory_space<vmem>>, vector<4x144xf32>
    %c0_33 = arith.constant 0 : index
    %c0_34 = arith.constant 0 : index
    %98 = vector.load %arg11[%c0_33, %c0_34] : memref<144x512xf32, #tpu.memory_space<vmem>>, vector<144x512xf32>
    %cst_35 = arith.constant dense<0.000000e+00> : vector<4x512xf32>
    %99 = tpu.matmul %97, %98, %cst_35 {dimension_numbers = #tpu.dot_dimension_numbers<[1], [0], [0], [1], [0, 0, 1, 1], [], []>} : vector<4x144xf32>, vector<144x512xf32>, vector<4x512xf32> -> vector<4x512xf32>
    %c0_36 = arith.constant 0 : index
    %c0_37 = arith.constant 0 : index
    %100 = vector.load %arg7[%c0_36, %c0_37] : memref<4x1xf32, #tpu.memory_space<vmem>>, vector<4x1xf32>
    %101 = vector.broadcast %100 : vector<4x1xf32> to vector<4x512xf32>
    %102 = arith.addf %99, %101 : vector<4x512xf32>
    %cst_38 = arith.constant 0.000000e+00 : f32
    %103 = vector.broadcast %cst_38 : f32 to vector<4x512xf32>
    %104 = arith.maximumf %102, %103 : vector<4x512xf32>
    %c0_39 = arith.constant 0 : index
    %c0_40 = arith.constant 0 : index
    %105 = vector.load %arg10[%c0_39, %c0_40] : memref<4x512xf32, #tpu.memory_space<vmem>>, vector<4x512xf32>
    tpu.vector_store %arg10[%c0_39, %c0_40], %104 {strides = array<i32>} : memref<4x512xf32, #tpu.memory_space<vmem>>, vector<4x512xf32>,
    return
  }
  func.func @transform_0(%arg0: i32) -> (i32, i32) {
    %c0_i32 = arith.constant 0 : i32
    %c0_i32_0 = arith.constant 0 : i32
    return %c0_i32, %arg0 : i32, i32
  }
  func.func @transform_1(%arg0: i32) -> (i32, i32, i32) {
    %c0_i32 = arith.constant 0 : i32
    %c0_i32_0 = arith.constant 0 : i32
    %c0_i32_1 = arith.constant 0 : i32
    return %c0_i32, %c0_i32_0, %arg0 : i32, i32, i32
  }
  func.func @transform_2(%arg0: i32) -> (i32, i32) {
    %c0_i32 = arith.constant 0 : i32
    %c0_i32_0 = arith.constant 0 : i32
    %c0_i32_1 = arith.constant 0 : i32
    return %c0_i32, %c0_i32_0 : i32, i32
  }
  func.func @transform_3(%arg0: i32) -> (i32, i32, i32) {
    %c0_i32 = arith.constant 0 : i32
    %c0_i32_0 = arith.constant 0 : i32
    %c0_i32_1 = arith.constant 0 : i32
    %c0_i32_2 = arith.constant 0 : i32
    return %c0_i32, %c0_i32_0, %c0_i32_1 : i32, i32, i32
  }
  func.func @transform_4(%arg0: i32) -> i32 {
    %c0_i32 = arith.constant 0 : i32
    %c0_i32_0 = arith.constant 0 : i32
    return %c0_i32 : i32
  }
  func.func @transform_5(%arg0: i32) -> (i32, i32) {
    %c0_i32 = arith.constant 0 : i32
    %c0_i32_0 = arith.constant 0 : i32
    %c0_i32_1 = arith.constant 0 : i32
    return %c0_i32, %c0_i32_0 : i32, i32
  }
  func.func @transform_6(%arg0: i32) -> (i32, i32) {
    %c0_i32 = arith.constant 0 : i32
    %c0_i32_0 = arith.constant 0 : i32
    %c0_i32_1 = arith.constant 0 : i32
    return %c0_i32, %c0_i32_0 : i32, i32
  }
  func.func @transform_7(%arg0: i32) -> (i32, i32, i32) {
    %c0_i32 = arith.constant 0 : i32
    %c0_i32_0 = arith.constant 0 : i32
    %c0_i32_1 = arith.constant 0 : i32
    %c0_i32_2 = arith.constant 0 : i32
    return %c0_i32, %c0_i32_0, %c0_i32_1 : i32, i32, i32
  }
  func.func @transform_8(%arg0: i32) -> (i32, i32) {
    %c0_i32 = arith.constant 0 : i32
    %c0_i32_0 = arith.constant 0 : i32
    %c0_i32_1 = arith.constant 0 : i32
    return %c0_i32, %c0_i32_0 : i32, i32
  }
  func.func @transform_9(%arg0: i32) -> (i32, i32) {
    %c0_i32 = arith.constant 0 : i32
    %c0_i32_0 = arith.constant 0 : i32
    return %c0_i32, %arg0 : i32, i32
  }
}

</mosaic_0001>

<bundles_post_ra>
// kernel: tpu_custom_call.1
= control target key start
LH: loop header
LB: loop body
LE: loop exit
PB: predicated region body
PF: predicated region fallthrough
CT: control target
= control target key end

     0   :  { %14 = vsyncpa [#allocation4], 0  ;;  %s2432_s0 = inlined_call_operand.hbm [shape: f32[4,512], index: 0, kind: input, shape index: {}]   ;;  %s2433_s1 = inlined_call_operand.hbm [shape: f32[4,16,32], index: 1, kind: input, shape index: {}]   ;;  %s2434_s2 = inlined_call_operand.vmem [shape: f32[4,1], index: 2, kind: input, shape index: {}]   ;;  %s2435_s3 = inlined_call_operand.vmem [shape: f32[4,1,1], index: 3, kind: input, shape index: {}]   ;;  %s2436_s4 = inlined_call_operand.vmem [shape: f32[2], index: 4, kind: input, shape index: {}]   ;;  %s2437_s5 = inlined_call_operand.hbm [shape: f32[4,144], index: 5, kind: input, shape index: {}]   ;;  %s2438_s6 = inlined_call_operand.vmem [shape: f32[4,1], index: 6, kind: input, shape index: {}]   ;;  %s2439_s7 = inlined_call_operand.vmem [shape: f32[9,1,512], index: 7, kind: input, shape index: {}]   ;;  %s2440_s8 = inlined_call_operand.hbm [shape: f32[32,512], index: 8, kind: input, shape index: {}]   ;;  %s2441_s9 = inlined_call_operand.hbm [shape: f32[4,512], index: 9, kind: output, shape index: {}]  }
   0x1   :  { %15 = vsyncpa [#allocation8], 0 }
   0x2   :  { %16 = vsyncpa [#allocation6], 0 }
   0x3   :  { %17 = vsyncpa [#allocation12], 0 }
   0x4   :  { %18 = vsyncpa [#allocation5], 0  ;;  %s1619_s30 = smov [#allocation7]   ;;  %s1485_s13 = scalar_lea.hbm %s2433_s1, 1024 }
   0x5   :  { %s34_s10 = sshll.u32 %s1619_s30, 4  ;;  %p1486_p0 = scmp.ne.s32.totalorder %s2433_s1, %s1485_s13  ;;  %s35_s10 = int_to_ptr.vmem [resolvable:$true] %s34_s10 }
   0x6   :  { %p1489_p1 = scmp.lt.u32.totalorder %s1485_s13, %s2433_s1 }
   0x8   :  { %p1491_p2 = pnand %p1489_p1, %p1486_p0 }
   0xa   :  { %1494 = shalt.err (!%p1491_p2)
}
   0xb   :  { %s1495_s18 = scalar_lea.vmem %s35_s10, 1024  ;;  %p1500_p4 = scmp.lt.s32.totalorder %s35_s10, %s35_s10 }
   0xc   :  { %p1496_p3 = scmp.ne.s32.totalorder %s35_s10, %s1495_s18  ;;  %p1501_p5 = scmp.lt.s32.totalorder %s1495_s18, %s1495_s18 }
   0xe   :  { %p1502_p6 = por %p1501_p5, %p1500_p4 }
  0x10   :  { %p1503_p7 = pnand %p1502_p6, %p1496_p3 }
  0x12   :  { %1506 = shalt.err (!%p1503_p7)
}
  0x13   :  { %s1620_s19 = smov 128   ;;  %s1621_s20 = smov 8  }
  0x14   :  { %40 = dma.hbm_to_vmem [thread:$0]  %s2433_s1, 1024, %s35_s10, [#allocation8], %s1620_s19, %s1620_s19, %s1621_s20  }
  0x15   :  { %s1622_s23 = smov [#allocation3]   ;;  %s51_s27 = sshll.u32 %s2436_s4, 4  ;;  %s52_s27 = int_to_ptr.vmem [resolvable:$true] %s51_s27 }
  0x16   :  { %s25_s24 = sshll.u32 %s1622_s23, 4  ;;  %s1507_s30 = scalar_lea.hbm %s2432_s0, 256  ;;  %s26_s24 = int_to_ptr.vmem [resolvable:$true] %s25_s24 }
  0x17   :  { %p1508_p8 = scmp.ne.s32.totalorder %s2432_s0, %s1507_s30  ;;  %p1511_p9 = scmp.lt.u32.totalorder %s1507_s30, %s2432_s0 }
  0x19   :  { %p1513_p10 = pnand %p1511_p9, %p1508_p8 }
  0x1b   :  { %1516 = shalt.err (!%p1513_p10)
}
  0x1c   :  { %s1517_s1 = scalar_lea.vmem %s26_s24, 256  ;;  %p1522_p12 = scmp.lt.s32.totalorder %s26_s24, %s26_s24 }
  0x1d   :  { %p1518_p11 = scmp.ne.s32.totalorder %s26_s24, %s1517_s1  ;;  %p1523_p13 = scmp.lt.s32.totalorder %s1517_s1, %s1517_s1 }
  0x1f   :  { %p1524_p0 = por %p1523_p13, %p1522_p12 }
  0x21   :  { %p1525_p1 = pnand %p1524_p0, %p1518_p11 }
  0x23   :  { %1528 = shalt.err (!%p1525_p1)
}
  0x24   :  { %28 = dma.hbm_to_vmem [thread:$0]  %s2432_s0, 256, %s26_s24, [#allocation4]  }
  0x25   :  { %s1529_s15 = scalar_lea.vmem %s52_s27, 16  ;;  %p1534_p3 = scmp.lt.s32.totalorder %s52_s27, %s52_s27 }
  0x26   :  { %p1530_p2 = scmp.ne.s32.totalorder %s52_s27, %s1529_s15  ;;  %p1535_p4 = scmp.lt.s32.totalorder %s1529_s15, %s1529_s15 }
  0x28   :  { %p1536_p5 = por %p1535_p4, %p1534_p3 }
  0x2a   :  { %p1537_p6 = pnand %p1536_p5, %p1530_p2 }
  0x2c   :  { %1540 = shalt.err (!%p1537_p6)
}
  0x2d   :  { %s1623_s16 = smov [#allocation9]   ;;  %s1624_s17 = smov [#allocation10]  }
  0x2e   :  { %54 = dma.vmem_to_smem %s52_s27, 16, %s1623_s16, [#allocation6]  }
  0x2f   :  { %s61_s18 = sshll.u32 %s1624_s17, 4  ;;  %s1625_s19 = smov [#allocation11]   ;;  %s62_s18 = int_to_ptr.vmem [resolvable:$true] %s61_s18 }
  0x30   :  { %s74_s20 = sshll.u32 %s1625_s19, 4  ;;  %s1541_s23 = scalar_lea.hbm %s2437_s5, 128  ;;  %s75_s20 = int_to_ptr.vmem [resolvable:$true] %s74_s20 }
  0x31   :  { %p1542_p7 = scmp.ne.s32.totalorder %s2437_s5, %s1541_s23  ;;  %p1545_p8 = scmp.lt.u32.totalorder %s1541_s23, %s2437_s5 }
  0x33   :  { %p1547_p9 = pnand %p1545_p8, %p1542_p7 }
  0x35   :  { %1550 = shalt.err (!%p1547_p9)
}
  0x36   :  { %s1551_s27 = scalar_lea.vmem %s62_s18, 128  ;;  %p1556_p11 = scmp.lt.s32.totalorder %s62_s18, %s62_s18 }
  0x37   :  { %p1552_p10 = scmp.ne.s32.totalorder %s62_s18, %s1551_s27  ;;  %p1557_p12 = scmp.lt.s32.totalorder %s1551_s27, %s1551_s27 }
  0x39   :  { %p1558_p13 = por %p1557_p12, %p1556_p11 }
  0x3b   :  { %p1559_p0 = pnand %p1558_p13, %p1552_p10 }
  0x3d   :  { %1562 = shalt.err (!%p1559_p0)
}
  0x3e   :  { %64 = dma.hbm_to_vmem [thread:$0]  %s2437_s5, 128, %s62_s18, [#allocation8]  }
  0x3f   :  { %s1563_s12 = scalar_lea.hbm %s2440_s8, 2048 }
  0x40   :  { %p1564_p1 = scmp.ne.s32.totalorder %s2440_s8, %s1563_s12  ;;  %p1567_p2 = scmp.lt.u32.totalorder %s1563_s12, %s2440_s8 }
  0x42   :  { %p1569_p3 = pnand %p1567_p2, %p1564_p1 }
  0x44   :  { %1572 = shalt.err (!%p1569_p3)
}
  0x45   :  { %s1573_s10 = scalar_lea.vmem %s75_s20, 2048  ;;  %p1578_p5 = scmp.lt.s32.totalorder %s75_s20, %s75_s20 }
  0x46   :  { %p1574_p4 = scmp.ne.s32.totalorder %s75_s20, %s1573_s10  ;;  %p1579_p6 = scmp.lt.s32.totalorder %s1573_s10, %s1573_s10 }
  0x48   :  { %p1580_p7 = por %p1579_p6, %p1578_p5 }
  0x4a   :  { %p1581_p8 = pnand %p1580_p7, %p1574_p4 }
  0x4c   :  { %1584 = shalt.err (!%p1581_p8)
}
  0x4d   :  { %s1626_s5 = smov 512   ;;  %s1627_s15 = smov 32  }
  0x4e   :  { %80 = dma.hbm_to_vmem [thread:$0]  %s2440_s8, 2048, %s75_s20, [#allocation12], %s1626_s5, %s1626_s5, %s1627_s15  }
  0x4f   :  { %1607 = dma.done.wait [#allocation4], 256  }
  0x50   :  { %1608 = vsyncadd [#allocation4], 4294967040 }
  0x51   :  { %1609 = dma.done.wait [#allocation8], 1024  }
  0x52   :  { %1610 = vsyncadd [#allocation8], 4294966272 }
  0x53   :  { %1611 = dma.done.wait [#allocation6], 16  }
  0x54   :  { %1612 = vsyncadd [#allocation6], 4294967280 }
  0x55   :  { %1613 = dma.done.wait [#allocation8], 128  }
  0x56   :  { %1614 = vsyncadd [#allocation8], 4294967168 }
  0x57   :  { %1615 = dma.done.wait [#allocation12], 2048  }
  0x58   :  { %1616 = vsyncadd [#allocation12], 4294965248 }
  0x59   :  { %96 = sfence }
  0x5a   :  { %v1364_v0 = vld [vmem:[%s2435_s3 + $0x2] ss:$0 sm:$0xff]  ;;  %v1362_v1 = vld [vmem:[%s2435_s3] ss:$0 sm:$0xff]  ;;  %v1628_v2 = vmov 0   ;;  %v234_v8 = vld [vmem:[#allocation11 + $0x18] sm:$0xff] }
  0x5b   :  { %1481 = vset.pattern.permute.xlu1 %v1628_v2  ;;  %1480 = vset.pattern.permute.xlu0 %v1628_v2  ;;  %v1365_v3 = vld [vmem:[%s2435_s3 + $0x3] ss:$0 sm:$0xff]  ;;  %v1363_v4 = vld [vmem:[%s2435_s3 + $0x1] ss:$0 sm:$0xff]  ;;  %v238_v10 = vld [vmem:[#allocation11 + $0x38] sm:$0xff]  ;;  %v1629_v30 = vmov 0.0  }
  0x5c   :  { %196 = vperm.xlu1 %1481, %v1364_v0   ;;  %188 = vperm.xlu0 %1480, %v1362_v1   ;;  %v99_v5 = vld [vmem:[%s2434_s2] sm:$0xf]  ;;  %v231_v11 = vld [vmem:[#allocation11] sm:$0xff]  ;;  %v1380_v13 = vpack.c.bf16 %v238_v10, %v234_v8  ;;  %v233_v15 = vld [vmem:[#allocation11 + $0x10] sm:$0xff]  ;;  %s1757_s2 = sld [smem:[#allocation9 + $0x1]]  ;;  %vm211_vm0 = vcmask 261120  }
  0x5d   :  { %v232_v6 = vld [vmem:[#allocation11 + $0x8] sm:$0xff]  ;;  %v235_v12 = vld [vmem:[#allocation11 + $0x20] sm:$0xff]  ;;  %v237_v16 = vld [vmem:[#allocation11 + $0x30] sm:$0xff]  ;;  %317 = vmatprep.mubr.f32.mxu0 %v1629_v30  ;;  %394 = vmatprep.mubr.f32.mxu1 %v1629_v30  ;;  %vm117_vm1 = vcmask 1043456   ;;  %s97_s3 = sld [smem:[#allocation9]]  ;;  %s1630_s26 = smov 17  }
  0x5e   :  { %v236_v7 = vld [vmem:[#allocation11 + $0x28] sm:$0xff]  ;;  %v1374_v14 = vpack.c.bf16 %v235_v12, %v231_v11  ;;  %v1382_v17 = vpack.c.bf16 %v237_v16, %v233_v15  ;;  %1381 = vmatprep.subr.bf16.mxu1 %v1380_v13  ;;  %v242_v20 = vld [vmem:[#allocation11 + $0x58] sm:$0xff]  ;;  %v239_v23 = vld [vmem:[#allocation11 + $0x40] sm:$0xff]  ;;  %s1631_s27 = smov 16   ;;  %s1632_s28 = smov 15   ;;  %vm1184_vm4 = vcmask 130048  }
  0x5f   :  { %v1372_v9 = vpack.c.bf16 %v236_v7, %v232_v6  ;;  %v240_v18 = vld [vmem:[#allocation11 + $0x48] sm:$0xff]  ;;  %v246_v22 = vld [vmem:[#allocation11 + $0x78] sm:$0xff]  ;;  %v243_v24 = vld [vmem:[#allocation11 + $0x60] sm:$0xff]  ;;  %s1633_s29 = smov 1   ;;  %s1634_s30 = smov 127  }
  0x60   :  { %200 = vperm.xlu1 %1481, %v1365_v3   ;;  %192 = vperm.xlu0 %1480, %v1363_v4   ;;  %v244_v19 = vld [vmem:[#allocation11 + $0x68] sm:$0xff]  ;;  %v1384_v25 = vpack.c.bf16 %v246_v22, %v242_v20  ;;  %v1378_v26 = vpack.c.bf16 %v243_v24, %v239_v23  ;;  %v241_v27 = vld [vmem:[#allocation11 + $0x50] sm:$0xff]  ;;  %v159_v32 = vld [vmem:[#allocation7] sm:$0xff]  ;;  %s1635_s11 = smov 113   ;;  %s1636_s5 = smov 112  }
  0x61   :  { %1373 = vmatprep.subr.bf16.mxu0 %v1372_v9  ;;  %1383 = vmatpush1.bf16.msra.mxu1 %v1382_v17  ;;  %v1376_v21 = vpack.c.bf16 %v244_v19, %v240_v18  ;;  %v245_v28 = vld [vmem:[#allocation11 + $0x70] sm:$0xff]  ;;  %v160_v33 = vld [vmem:[#allocation7 + $0x8] sm:$0xff]  ;;  %v163_v35 = vld [vmem:[#allocation7 + $0x20] sm:$0xff]  ;;  %s1637_s15 = smov 111  }
  0x62   :  { %1375 = vmatpush1.bf16.msra.mxu0 %v1374_v14  ;;  %v1386_v29 = vpack.c.bf16 %v245_v28, %v241_v27  ;;  %1385 = vmatprep.subr.bf16.mxu1 %v1384_v25  ;;  %v164_v36 = vld [vmem:[#allocation7 + $0x28] sm:$0xff]  ;;  %v161_v37 = vld [vmem:[#allocation7 + $0x10] sm:$0xff]  ;;  %v162_v38 = vld [vmem:[#allocation7 + $0x18] sm:$0xff]  ;;  %v226_v55 = vstv %s1757_s2 }
  0x63   :  { %1377 = vmatprep.subr.bf16.mxu0 %v1376_v21  ;;  %v100_v39 = vld [vmem:[#allocation3] sm:$0xff]  ;;  %v101_v40 = vld [vmem:[#allocation3 + $0x8] sm:$0xff] }
  0x64   :  { %104 = vperm.xlu0 %1480, %v99_v5   ;;  %v165_v43 = vld [vmem:[#allocation7 + $0x30] sm:$0xff]  ;;  %v166_v44 = vld [vmem:[#allocation7 + $0x38] sm:$0xff]  ;;  %v109_v51 = vcombine.high %v100_v39, %v100_v39  ;;  %v110_v52 = vcombine.high %v101_v40, %v101_v40 }
  0x65   :  { %1387 = vmatpush1.bf16.msra.mxu1 %v1386_v29 }
  0x66   :  { %1379 = vmatpush1.bf16.msra.mxu0 %v1378_v26 }
  0xdb   :  { %v197_v31 = vpop.permute.xlu1 %196  ;;  %v189_v34 = vpop.permute.xlu0 %188 }
  0xdc   :  { %v203_v41 = vmul.f32 %v189_v34, %v159_v32  ;;  %v204_v42 = vmul.f32 %v189_v34, %v160_v33  ;;  %v207_v45 = vmul.f32 %v197_v31, %v163_v35  ;;  %v208_v46 = vmul.f32 %v197_v31, %v164_v36 }
  0xde   :  { %v212_v56 = vsel %vm211_vm0, %v203_v41, 0.0  ;;  %v219_v57 = vsel %vm211_vm0, %v204_v42, 0.0  ;;  %v215_v60 = vsel %vm211_vm0, %v207_v45, 0.0  ;;  %v222_v61 = vsel %vm211_vm0, %v208_v46, 0.0 }
  0xdf   :  { %v201_v47 = vpop.permute.xlu1 %200  ;;  %v193_v48 = vpop.permute.xlu0 %192 }
  0xe0   :  { %v205_v49 = vmul.f32 %v193_v48, %v161_v37  ;;  %v206_v50 = vmul.f32 %v193_v48, %v162_v38  ;;  %v209_v53 = vmul.f32 %v201_v47, %v165_v43  ;;  %v210_v54 = vmul.f32 %v201_v47, %v166_v44 }
  0xe2   :  { %v213_v58 = vsel %vm211_vm0, %v205_v49, 0.0  ;;  %v220_v59 = vsel %vm211_vm0, %v206_v50, 0.0  ;;  %v217_v5 = vsel %vm211_vm0, %v209_v53, 0.0  ;;  %v224_v6 = vsel %vm211_vm0, %v210_v54, 0.0 }
  0xe3   :  { %v214_v62 = vadd.f32 %v213_v58, %v212_v56  ;;  %v221_v63 = vadd.f32 %v220_v59, %v219_v57  ;;  %v105_v0 = vpop.permute.xlu0 %104 }
  0xe4   :  { %v113_v1 = vmul.f32 %v105_v0, %v100_v39  ;;  %v114_v2 = vmul.f32 %v109_v51, %v105_v0  ;;  %v115_v3 = vmul.f32 %v105_v0, %v101_v40  ;;  %v116_v4 = vmul.f32 %v110_v52, %v105_v0 }
  0xe5   :  { %v216_v7 = vadd.f32 %v215_v60, %v214_v62  ;;  %v223_v8 = vadd.f32 %v222_v61, %v221_v63  ;;  %v146_v40 = vstv %s97_s3 }
  0xe6   :  { %v118_v9 = vsel %vm117_vm1, %v113_v1, 0.0  ;;  %v125_v10 = vsel %vm117_vm1, %v114_v2, 0.0  ;;  %v132_v11 = vsel %vm117_vm1, %v115_v3, 0.0  ;;  %v139_v12 = vsel %vm117_vm1, %v116_v4, 0.0 }
  0xe7   :  { %v218_v13 = vadd.f32 %v217_v5, %v216_v7  ;;  %v225_v14 = vadd.f32 %v224_v6, %v223_v8  ;;  %v119_v15 = vrot.slane %v118_v9, 4  ;;  %v126_v16 = vrot.slane %v125_v10, 4 }
  0xe8   :  { %v133_v17 = vrot.slane %v132_v11, 4  ;;  %v140_v18 = vrot.slane %v139_v12, 4  ;;  %v432_v3 = vlaneseq }
  0xe9   :  { %v120_v19 = vadd.f32 %v119_v15, %v118_v9  ;;  %v127_v20 = vadd.f32 %v126_v16, %v125_v10  ;;  %v227_v21 = vadd.f32 %v226_v55, %v218_v13  ;;  %v228_v27 = vadd.f32 %v226_v55, %v225_v14  ;;  %v410_v10 = vld [vmem:[%s2439_s7 + $0xc] sm:$0xf]  ;;  %v411_v14 = vld [vmem:[%s2439_s7 + $0x10] sm:$0xf] }
  0xea   :  { %v134_v22 = vadd.f32 %v133_v17, %v132_v11  ;;  %v141_v23 = vadd.f32 %v140_v18, %v139_v12  ;;  %v457_v5 = vshrl.u32 %v432_v3, 7  ;;  %v1838_v7 = vand.u32 127, %v432_v3 }
  0xeb   :  { %v121_v24 = vrot.slane %v120_v19, 2  ;;  %v128_v25 = vrot.slane %v127_v20, 2  ;;  %v229_v26 = vmax.f32 %v227_v21, 0.0  ;;  %v230_v37 = vmax.f32 %v228_v27, 0.0 }
  0xec   :  { %v135_v28 = vrot.slane %v134_v22, 2  ;;  %v142_v29 = vrot.slane %v141_v23, 2  ;;  %v1840_v9 = vsub.s32 2, %v457_v5  ;;  %v1845_v11 = vsub.s32 0, %v457_v5 }
  0xed   :  { %v122_v31 = vadd.f32 %v121_v24, %v120_v19  ;;  %v129_v32 = vadd.f32 %v128_v25, %v127_v20  ;;  %1366 = vmatmul.mubr.msk.f32.vlgmr.msra.gmra.mrb[0].mxu0 %vm211_vm0, %v229_v26  ;;  %1368 = vmatmul.mubr.msk.f32.vlgmr.msra.gmra.mrb[0].mxu1 %vm211_vm0, %v229_v26  ;;  %vm672_vm2 = vcmp.lt.s32.totalorder %v1838_v7, 1  ;;  %v1848_v12 = vsub.s32 1, %v457_v5  ;;  %v412_v25 = vld [vmem:[%s2439_s7 + $0x14] sm:$0xf] }
  0xee   :  { %v136_v33 = vadd.f32 %v135_v28, %v134_v22  ;;  %v143_v34 = vadd.f32 %v142_v29, %v141_v23  ;;  %323 = vmatprep.mubr.f32.mxu0 %v1629_v30  ;;  %400 = vmatprep.mubr.f32.mxu1 %v1629_v30  ;;  %2475 = vst [vmem:[#allocation20_spill] sm:$0xff] %v1840_v9  ;;  %v1850_v13 = vsub.s32 3, %v457_v5  ;;  %vm791_vm3 = vcmp.lt.s32.totalorder %v1838_v7, 127 }
  0xef   :  { %v123_v35 = vrot.slane %v122_v31, 1  ;;  %v130_v36 = vrot.slane %v129_v32, 1  ;;  %2476 = vst [vmem:[#allocation21_spill] sm:$0xff] %v1848_v12  ;;  %v705_v15 = vrot.slane %v410_v10, %v1845_v11  ;;  %v713_v20 = vrot.slane %v410_v10, %v1840_v9 }
  0xf0   :  { %v137_v38 = vrot.slane %v136_v33, 1  ;;  %v144_v39 = vrot.slane %v143_v34, 1  ;;  %2477 = vst [vmem:[#allocation22_spill] sm:$0xff] %v1850_v13  ;;  %v709_v23 = vrot.slane %v410_v10, %v1848_v12  ;;  %v1860_v24 = vrot.slane %v411_v14, %v1845_v11 }
  0xf1   :  { %v124_v41 = vadd.f32 %v123_v35, %v122_v31  ;;  %v131_v42 = vadd.f32 %v130_v36, %v129_v32  ;;  %1367 = vmatmul.mubr.msk.f32.gmra.mrb[2].mxu0 %vm211_vm0, %v230_v37  ;;  %1369 = vmatmul.mubr.msk.f32.gmra.mrb[2].mxu1 %vm211_vm0, %v230_v37  ;;  %v1866_v26 = vrot.slane %v411_v14, %v1840_v9  ;;  %vm451_vm5 = vcmp.lt.s32.totalorder %v1838_v7, 17 }
  0xf2   :  { %v138_v43 = vadd.f32 %v137_v38, %v136_v33  ;;  %v145_v44 = vadd.f32 %v144_v39, %v143_v34  ;;  %v717_v28 = vrot.slane %v410_v10, %v1850_v13  ;;  %v754_v29 = vrot.slane %v411_v14, %v1848_v12 }
  0xf3   :  { %v147_v45 = vadd.f32 %v146_v40, %v124_v41  ;;  %v148_v46 = vadd.f32 %v146_v40, %v131_v42  ;;  %v762_v31 = vrot.slane %v411_v14, %v1850_v13  ;;  %v1892_v42 = vrot.slane %v412_v25, %v1848_v12 }
  0xf4   :  { %v149_v47 = vadd.f32 %v146_v40, %v138_v43  ;;  %v150_v48 = vadd.f32 %v146_v40, %v145_v44  ;;  %v1895_v43 = vrot.slane %v412_v25, %v1850_v13  ;;  %vm434_vm6 = vcmp.lt.s32.totalorder %v1838_v7, 16 }
  0xf5   :  { %v1778_v49 = vmax.f32 %v147_v45, 0.0  ;;  %v1780_v30 = vmax.f32 %v148_v46, 0.0  ;;  %vm598_vm7 = vcmp.lt.s32.totalorder %v1838_v7, 15  ;;  %vm890_vm8 = vcmp.lt.s32.totalorder %v1838_v7, 113 }
  0xf6   :  { %v1784_v50 = vmax.f32 %v149_v47, 0.0  ;;  %v1786_v51 = vmax.f32 %v150_v48, 0.0  ;;  %vm873_vm9 = vcmp.lt.s32.totalorder %v1838_v7, 112  ;;  %vm1037_vm10 = vcmp.lt.s32.totalorder %v1838_v7, 111 }
  0xf7   :  { %445 = vrot.lane.b32.xlu0 %v1780_v30, %s1630_s26  ;;  %443 = vrot.lane.b32.xlu1 %v1778_v49, %s1630_s26 }
  0xfb   :  { %449 = vrot.lane.b32.xlu0 %v1786_v51, %s1630_s26  ;;  %447 = vrot.lane.b32.xlu1 %v1784_v50, %s1630_s26 }
  0xff   :  { %519 = vrot.lane.b32.xlu0 %v1780_v30, %s1631_s27  ;;  %517 = vrot.lane.b32.xlu1 %v1778_v49, %s1631_s27 }
 0x103   :  { %523 = vrot.lane.b32.xlu0 %v1786_v51, %s1631_s27  ;;  %521 = vrot.lane.b32.xlu1 %v1784_v50, %s1631_s27 }
 0x107   :  { %592 = vrot.lane.b32.xlu0 %v1780_v30, %s1632_s28  ;;  %590 = vrot.lane.b32.xlu1 %v1778_v49, %s1632_s28 }
 0x10b   :  { %596 = vrot.lane.b32.xlu0 %v1786_v51, %s1632_s28  ;;  %594 = vrot.lane.b32.xlu1 %v1784_v50, %s1632_s28 }
 0x10f   :  { %666 = vrot.lane.b32.xlu0 %v1780_v30, %s1633_s29  ;;  %664 = vrot.lane.b32.xlu1 %v1778_v49, %s1633_s29 }
 0x113   :  { %670 = vrot.lane.b32.xlu0 %v1786_v51, %s1633_s29  ;;  %668 = vrot.lane.b32.xlu1 %v1784_v50, %s1633_s29 }
 0x117   :  { %785 = vrot.lane.b32.xlu0 %v1780_v30, %s1634_s30  ;;  %783 = vrot.lane.b32.xlu1 %v1778_v49, %s1634_s30 }
 0x11b   :  { %789 = vrot.lane.b32.xlu0 %v1786_v51, %s1634_s30  ;;  %787 = vrot.lane.b32.xlu1 %v1784_v50, %s1634_s30 }
 0x11f   :  { %884 = vrot.lane.b32.xlu0 %v1780_v30, %s1635_s11  ;;  %882 = vrot.lane.b32.xlu1 %v1778_v49, %s1635_s11 }
 0x123   :  { %888 = vrot.lane.b32.xlu0 %v1786_v51, %s1635_s11  ;;  %886 = vrot.lane.b32.xlu1 %v1784_v50, %s1635_s11 }
 0x169   :  { %v1814_v52 = vpop.permute.xlu1 %443  ;;  %v1816_v53 = vpop.permute.xlu0 %445 }
 0x16d   :  { %v1818_v54 = vpop.permute.xlu1 %447  ;;  %v1820_v55 = vpop.permute.xlu0 %449 }
 0x171   :  { %v1822_v56 = vpop.permute.xlu1 %517  ;;  %v1824_v57 = vpop.permute.xlu0 %519 }
 0x175   :  { %v1826_v58 = vpop.permute.xlu1 %521  ;;  %v1828_v59 = vpop.permute.xlu0 %523 }
 0x179   :  { %v1830_v60 = vpop.permute.xlu1 %590  ;;  %v1832_v61 = vpop.permute.xlu0 %592 }
 0x17d   :  { %v1834_v62 = vpop.permute.xlu1 %594  ;;  %v1836_v63 = vpop.permute.xlu0 %596 }
 0x181   :  { %v665_v0 = vpop.permute.xlu1 %664  ;;  %v667_v1 = vpop.permute.xlu0 %666 }
 0x182   :  { %v675_v16 = vsel %vm672_vm2, %v665_v0, %v667_v1 }
 0x183   :  { %v684_v32 = vrot.slane %v675_v16, %v1845_v11 }
 0x185   :  { %v669_v2 = vpop.permute.xlu1 %668  ;;  %v671_v4 = vpop.permute.xlu0 %670 }
 0x186   :  { %v676_v17 = vsel %vm672_vm2, %v671_v4, %v665_v0  ;;  %v674_v18 = vsel %vm672_vm2, %v667_v1, %v669_v2  ;;  %v673_v21 = vsel %vm672_vm2, %v669_v2, %v671_v4  ;;  %v824_v1 = vrot.slane %v412_v25, %v1845_v11 }
 0x187   :  { %v680_v33 = vrot.slane %v676_v17, %v1845_v11  ;;  %v688_v34 = vrot.slane %v674_v18, %v1845_v11  ;;  %v692_v38 = vrot.slane %v673_v21, %v1845_v11  ;;  %v1906_v2 = vrot.slane %v412_v25, %v1840_v9 }
 0x189   :  { %v784_v6 = vpop.permute.xlu1 %783  ;;  %v786_v8 = vpop.permute.xlu0 %785 }
 0x18a   :  { %v794_v27 = vsel %vm791_vm3, %v784_v6, %v786_v8 }
 0x18b   :  { %v799_v44 = vrot.slane %v794_v27, %v1845_v11 }
 0x18d   :  { %v788_v19 = vpop.permute.xlu1 %787  ;;  %v790_v22 = vpop.permute.xlu0 %789 }
 0x18e   :  { %v793_v35 = vsel %vm791_vm3, %v786_v8, %v788_v19  ;;  %v792_v39 = vsel %vm791_vm3, %v788_v19, %v790_v22  ;;  %v795_v48 = vsel %vm791_vm3, %v790_v22, %v784_v6 }
 0x18f   :  { %v803_v0 = vrot.slane %v793_v35, %v1845_v11  ;;  %v807_v3 = vrot.slane %v792_v39, %v1845_v11 }
 0x1c0   :  { %v1878_v36 = vpop.f32.mrb[0].mxu0  ;;  %v1880_v37 = vpop.f32.mrb[0].mxu1 }
 0x1c1   :  { %v1885_v40 = vpop.f32.mrb[1].mxu0  ;;  %v1887_v41 = vpop.f32.mrb[1].mxu1  ;;  %416 = vrot.lane.b32.xlu1 %v1878_v36, %s1631_s27  ;;  %v693_v45 = vadd.f32 %v680_v33, %v1878_v36  ;;  %v695_v46 = vadd.f32 %v688_v34, %v1880_v37  ;;  %v738_v4 = vadd.f32 %v1878_v36, %v1778_v49  ;;  %v812_v5 = vadd.f32 %v799_v44, %v1878_v36 }
 0x1c2   :  { %v694_v47 = vadd.f32 %v684_v32, %v1885_v40  ;;  %v696_v6 = vadd.f32 %v692_v38, %v1887_v41  ;;  %v740_v14 = vadd.f32 %v1880_v37, %v1784_v50  ;;  %v739_v21 = vadd.f32 %v1885_v40, %v1780_v30 }
 0x1c3   :  { %v1934_v27 = vmul.f32 %v705_v15, %v693_v45  ;;  %v741_v45 = vadd.f32 %v1887_v41, %v1786_v51 }
 0x1c4   :  { %v1912_v8 = vpop.f32.mrb[2].mxu0  ;;  %v1914_v10 = vpop.f32.mrb[2].mxu1  ;;  %v1932_v25 = vmul.f32 %v709_v23, %v694_v47  ;;  %v1947_v9 = vmul.f32 %v717_v28, %v696_v6 }
 0x1c5   :  { %v697_v16 = vadd.f32 %v680_v33, %v1912_v8  ;;  %v699_v17 = vadd.f32 %v688_v34, %v1914_v10  ;;  %v1921_v18 = vpop.f32.mrb[3].mxu0  ;;  %v1923_v19 = vpop.f32.mrb[3].mxu1  ;;  %418 = vrot.lane.b32.xlu0 %v1912_v8, %s1631_s27  ;;  %424 = vrot.lane.b32.xlu1 %v1880_v37, %s1631_s27  ;;  %2479 = vst [vmem:[#allocation24_spill] sm:$0xff] %v1934_v27 }
 0x1c6   :  { %v698_v22 = vadd.f32 %v684_v32, %v1921_v18  ;;  %2478 = vst [vmem:[#allocation23_spill] sm:$0xff] %v1932_v25  ;;  %v1936_v33 = vmul.f32 %v713_v20, %v695_v46  ;;  %v742_v34 = vadd.f32 %v1912_v8, %v1778_v49  ;;  %v700_v35 = vadd.f32 %v692_v38, %v1923_v19 }
 0x1c7   :  { %v1941_v39 = vmul.f32 %v705_v15, %v697_v16  ;;  %v743_v13 = vadd.f32 %v1921_v18, %v1780_v30  ;;  %2483 = vst [vmem:[#allocation28_spill] sm:$0xff] %v1947_v9  ;;  %v1949_v32 = vmul.f32 %v713_v20, %v699_v17  ;;  %v1959_v38 = vmul.f32 %v754_v29, %v739_v21 }
 0x1c8   :  { %2480 = vst [vmem:[#allocation25_spill] sm:$0xff] %v1936_v33  ;;  %v1945_v12 = vmul.f32 %v709_v23, %v698_v22  ;;  %v1955_v46 = vmul.f32 %v717_v28, %v700_v35  ;;  %v744_v23 = vadd.f32 %v1914_v10, %v1784_v50  ;;  %v745_v6 = vadd.f32 %v1923_v19, %v1786_v51 }
 0x1c9   :  { %2481 = vst [vmem:[#allocation26_spill] sm:$0xff] %v1941_v39  ;;  %2484 = vst [vmem:[#allocation29_spill] sm:$0xff] %v1949_v32  ;;  %426 = vrot.lane.b32.xlu0 %v1914_v10, %s1631_s27  ;;  %v1961_v47 = vmul.f32 %v754_v29, %v743_v13  ;;  %420 = vrot.lane.b32.xlu1 %v1885_v40, %s1631_s27  ;;  %v816_v16 = vadd.f32 %v799_v44, %v1912_v8 }
 0x1ca   :  { %2482 = vst [vmem:[#allocation27_spill] sm:$0xff] %v1945_v12  ;;  %2485 = vst [vmem:[#allocation30_spill] sm:$0xff] %v1955_v46  ;;  %v1978_v17 = vmul.f32 %v762_v31, %v741_v45  ;;  %v1980_v21 = vmul.f32 %v762_v31, %v745_v6  ;;  %v1983_v22 = vmul.f32 %v1860_v24, %v738_v4 }
 0x1cb   :  { %2486 = vst [vmem:[#allocation31_spill] sm:$0xff] %v1959_v38  ;;  %2487 = vst [vmem:[#allocation32_spill] sm:$0xff] %v1961_v47  ;;  %v1986_v35 = vmul.f32 %v1860_v24, %v742_v34  ;;  %v813_v28 = vadd.f32 %v803_v0, %v1885_v40  ;;  %v811_v44 = vrot.slane %v795_v48, %v1845_v11 }
 0x1cc   :  { %2488 = vst [vmem:[#allocation33_spill] sm:$0xff] %v1978_v17  ;;  %2489 = vst [vmem:[#allocation34_spill] sm:$0xff] %v1980_v21  ;;  %v814_v15 = vadd.f32 %v807_v3, %v1880_v37  ;;  %v818_v13 = vadd.f32 %v807_v3, %v1914_v10  ;;  %v817_v31 = vadd.f32 %v803_v0, %v1921_v18 }
 0x1cd   :  { %2490 = vst [vmem:[#allocation35_spill] sm:$0xff] %v1983_v22  ;;  %2491 = vst [vmem:[#allocation36_spill] sm:$0xff] %v1986_v35  ;;  %422 = vrot.lane.b32.xlu0 %v1921_v18, %s1631_s27  ;;  %428 = vrot.lane.b32.xlu1 %v1887_v41, %s1631_s27  ;;  %v2002_v48 = vmul.f32 %v1866_v26, %v740_v14  ;;  %v2005_v34 = vmul.f32 %v1866_v26, %v744_v23 }
 0x1ce   :  { %v2008_v3 = vmul.f32 %v1892_v42, %v813_v28  ;;  %v2011_v0 = vmul.f32 %v1892_v42, %v817_v31  ;;  %v815_v45 = vadd.f32 %v811_v44, %v1887_v41  ;;  %v819_v6 = vadd.f32 %v811_v44, %v1923_v19 }
 0x1cf   :  { %2492 = vst [vmem:[#allocation37_spill] sm:$0xff] %v2002_v48  ;;  %2493 = vst [vmem:[#allocation38_spill] sm:$0xff] %v2005_v34  ;;  %v2017_v4 = vmul.f32 %v824_v1, %v812_v5  ;;  %v2019_v14 = vmul.f32 %v824_v1, %v816_v16  ;;  %v2035_v1 = vmul.f32 %v1906_v2, %v814_v15 }
 0x1d0   :  { %2494 = vst [vmem:[#allocation39_spill] sm:$0xff] %v2008_v3  ;;  %2495 = vst [vmem:[#allocation40_spill] sm:$0xff] %v2011_v0  ;;  %v2026_v42 = vmul.f32 %v1895_v43, %v815_v45  ;;  %v2029_v23 = vmul.f32 %v1895_v43, %v819_v6  ;;  %v2038_v28 = vmul.f32 %v1906_v2, %v818_v13 }
 0x1d1   :  { %2496 = vst [vmem:[#allocation41_spill] sm:$0xff] %v2017_v4  ;;  %2497 = vst [vmem:[#allocation42_spill] sm:$0xff] %v2019_v14  ;;  %430 = vrot.lane.b32.xlu0 %v1923_v19, %s1631_s27  ;;  %857 = vrot.lane.b32.xlu1 %v1878_v36, %s1636_s5  ;;  %v2057_v36 = vld [vmem:[#allocation10] sm:$0xff]  ;;  %v525_v13 = vsel %vm434_vm6, %v1826_v58, %v1828_v59  ;;  %v526_v31 = vsel %vm434_vm6, %v1824_v57, %v1826_v58  ;;  %v2505_v4 = vld [vmem:[#allocation22_spill] sm:$0xff] }
 0x1d2   :  { %2498 = vst [vmem:[#allocation43_spill] sm:$0xff] %v2026_v42  ;;  %2499 = vst [vmem:[#allocation44_spill] sm:$0xff] %v2029_v23  ;;  %v601_v6 = vsel %vm598_vm7, %v1830_v60, %v1832_v61 }
 0x1d3   :  { %2500 = vst [vmem:[#allocation45_spill] sm:$0xff] %v2035_v1  ;;  %2501 = vst [vmem:[#allocation46_spill] sm:$0xff] %v2038_v28 }
 0x1d4   :  { %2502 = vst [vmem:[#allocation47_spill] sm:$0xff] %v2057_v36 }
 0x1d5   :  { %859 = vrot.lane.b32.xlu0 %v1912_v8, %s1636_s5  ;;  %861 = vrot.lane.b32.xlu1 %v1885_v40, %s1636_s5  ;;  %v1176_v40 = vld [vmem:[%s2438_s6] sm:$0xf]  ;;  %v455_v8 = vsel %vm451_vm5, %v1820_v55, %v1814_v52 }
 0x1d9   :  { %867 = vrot.lane.b32.xlu0 %v1914_v10, %s1636_s5  ;;  %865 = vrot.lane.b32.xlu1 %v1880_v37, %s1636_s5  ;;  %v1183_v37 = vcombine.high %v2057_v36, %v2057_v36  ;;  %v453_v10 = vsel %vm451_vm5, %v1816_v53, %v1818_v54 }
 0x1db   :  { %1370 = vmatprep.mubr.msk.f32.mxu0 %vm1184_vm4, %v1183_v37  ;;  %1371 = vmatprep.mubr.msk.f32.mxu1 %vm1184_vm4, %v1183_v37  ;;  %v602_v37 = vsel %vm598_vm7, %v1836_v63, %v1830_v60  ;;  %v540_v60 = vrot.slane %v526_v31, %v1845_v11 }
 0x1dd   :  { %958 = vrot.lane.b32.xlu0 %v1780_v30, %s1636_s5  ;;  %869 = vrot.lane.b32.xlu1 %v1887_v41, %s1636_s5  ;;  %v885_v41 = vpop.permute.xlu0 %884 }
 0x1e1   :  { %962 = vrot.lane.b32.xlu0 %v1786_v51, %s1636_s5  ;;  %956 = vrot.lane.b32.xlu1 %v1778_v49, %s1636_s5  ;;  %v889_v43 = vpop.permute.xlu0 %888 }
 0x1e5   :  { %863 = vrot.lane.b32.xlu0 %v1921_v18, %s1636_s5  ;;  %960 = vrot.lane.b32.xlu1 %v1784_v50, %s1636_s5 }
 0x1e9   :  { %871 = vrot.lane.b32.xlu0 %v1923_v19, %s1636_s5  ;;  %1029 = vrot.lane.b32.xlu1 %v1778_v49, %s1637_s15  ;;  %v883_v49 = vpop.permute.xlu1 %882  ;;  %v2084_v19 = vrot.slane %v455_v8, %v1845_v11 }
 0x1ed   :  { %1031 = vrot.lane.b32.xlu0 %v1780_v30, %s1637_s15  ;;  %1033 = vrot.lane.b32.xlu1 %v1784_v50, %s1637_s15  ;;  %v887_v30 = vpop.permute.xlu1 %886  ;;  %v454_v50 = vsel %vm451_vm5, %v1814_v52, %v1816_v53  ;;  %v467_v52 = vrot.slane %v453_v10, %v1845_v11  ;;  %v527_v53 = vsel %vm434_vm6, %v1822_v56, %v1824_v57  ;;  %v407_v10 = vld [vmem:[%s2439_s7] sm:$0xf] }
 0x1ee   :  { %v2081_v18 = vrot.slane %v454_v50, %v1845_v11  ;;  %v893_v50 = vsel %vm890_vm8, %v883_v49, %v885_v41  ;;  %v894_v57 = vsel %vm890_vm8, %v889_v43, %v883_v49  ;;  %v892_v58 = vsel %vm890_vm8, %v885_v41, %v887_v30  ;;  %v408_v49 = vld [vmem:[%s2439_s7 + $0x4] sm:$0xf]  ;;  %v409_v41 = vld [vmem:[%s2439_s7 + $0x8] sm:$0xf] }
 0x1ef   :  { %v2151_v31 = vrot.slane %v894_v57, %v1845_v11  ;;  %v2154_v44 = vrot.slane %v892_v58, %v1845_v11  ;;  %v484_v16 = vrot.slane %v407_v10, %v1845_v11  ;;  %v2175_v24 = vrot.slane %v408_v49, %v1845_v11 }
 0x1f0   :  { %v2182_v36 = vrot.slane %v409_v41, %v1845_v11  ;;  %v496_v14 = vrot.slane %v407_v10, %v2505_v4  ;;  %v569_v42 = vrot.slane %v408_v49, %v2505_v4  ;;  %v2196_v0 = vrot.slane %v409_v41, %v2505_v4 }
 0x1f1   :  { %1035 = vrot.lane.b32.xlu0 %v1786_v51, %s1637_s15  ;;  %1179 = vperm.xlu1 %1481, %v1176_v40   ;;  %v452_v51 = vsel %vm451_vm5, %v1818_v54, %v1820_v55  ;;  %v528_v55 = vsel %vm434_vm6, %v1828_v59, %v1822_v56  ;;  %v599_v56 = vsel %vm598_vm7, %v1834_v62, %v1836_v63 }
 0x1f2   :  { %v2094_v54 = vrot.slane %v452_v51, %v1845_v11  ;;  %v600_v40 = vsel %vm598_vm7, %v1832_v61, %v1834_v62  ;;  %v536_v59 = vrot.slane %v527_v53, %v1845_v11  ;;  %v2124_v8 = vrot.slane %v528_v55, %v1845_v11 }
 0x1f3   :  { %v544_v63 = vrot.slane %v525_v13, %v1845_v11  ;;  %v891_v61 = vsel %vm890_vm8, %v887_v30, %v889_v43  ;;  %v610_v51 = vrot.slane %v601_v6, %v1845_v11  ;;  %v606_v53 = vrot.slane %v602_v37, %v1845_v11 }
 0x1f4   :  { %v2142_v55 = vrot.slane %v600_v40, %v1845_v11  ;;  %v2145_v30 = vrot.slane %v599_v56, %v1845_v11  ;;  %v2148_v13 = vrot.slane %v893_v50, %v1845_v11  ;;  %v2161_v37 = vrot.slane %v891_v61, %v1845_v11  ;;  %v2503_v40 = vld [vmem:[#allocation20_spill] sm:$0xff]  ;;  %v2504_v61 = vld [vmem:[#allocation21_spill] sm:$0xff] }
 0x1f5   :  { %v492_v56 = vrot.slane %v407_v10, %v2503_v40  ;;  %v2165_v5 = vrot.slane %v408_v49, %v2503_v40  ;;  %v2168_v50 = vrot.slane %v409_v41, %v2503_v40  ;;  %v488_v26 = vrot.slane %v407_v10, %v2504_v61 }
 0x1f6   :  { %v561_v28 = vrot.slane %v408_v49, %v2504_v61  ;;  %v2191_v23 = vrot.slane %v409_v41, %v2504_v61 }
 0x233   :  { %v2067_v2 = vpop.permute.xlu1 %416 }
 0x237   :  { %v2091_v15 = vpop.permute.xlu0 %418  ;;  %v425_v45 = vpop.permute.xlu1 %424 }
 0x23b   :  { %v427_v62 = vpop.permute.xlu0 %426  ;;  %v421_v43 = vpop.permute.xlu1 %420 }
 0x23c   :  { %v2158_v6 = vsel %vm434_vm6, %v421_v43, %v425_v45  ;;  %v439_v57 = vsel %vm434_vm6, %v2067_v2, %v421_v43 }
 0x23d   :  { %v474_v29 = vadd.f32 %v467_v52, %v2158_v6  ;;  %v473_v48 = vadd.f32 %v2081_v18, %v439_v57  ;;  %v546_v34 = vadd.f32 %v536_v59, %v439_v57  ;;  %v547_v3 = vadd.f32 %v540_v60, %v2158_v6 }
 0x23e   :  { %v620_v22 = vadd.f32 %v610_v51, %v439_v57 }
 0x23f   :  { %v423_v58 = vpop.permute.xlu0 %422  ;;  %v429_v1 = vpop.permute.xlu1 %428  ;;  %v503_v17 = vmul.f32 %v492_v56, %v474_v29 }
 0x240   :  { %v438_v20 = vsel %vm434_vm6, %v423_v58, %v427_v62  ;;  %v440_v43 = vsel %vm434_vm6, %v2091_v15, %v423_v58  ;;  %v435_v58 = vsel %vm434_vm6, %v425_v45, %v429_v1  ;;  %v441_v10 = vsel %vm434_vm6, %v429_v1, %v2067_v2 }
 0x241   :  { %v478_v35 = vadd.f32 %v467_v52, %v438_v20  ;;  %v477_v21 = vadd.f32 %v2081_v18, %v440_v43  ;;  %v550_v33 = vadd.f32 %v536_v59, %v440_v43  ;;  %v472_v32 = vadd.f32 %v2084_v19, %v441_v10 }
 0x242   :  { %v551_v41 = vadd.f32 %v540_v60, %v438_v20  ;;  %v624_v47 = vadd.f32 %v610_v51, %v440_v43  ;;  %v625_v1 = vadd.f32 %v2142_v55, %v438_v20  ;;  %v475_v29 = vadd.f32 %v2094_v54, %v435_v58 }
 0x243   :  { %v431_v49 = vpop.permute.xlu0 %430  ;;  %v2205_v38 = vpop.permute.xlu1 %857  ;;  %v507_v59 = vmul.f32 %v492_v56, %v478_v35  ;;  %v501_v60 = vmul.f32 %v484_v16, %v472_v32  ;;  %v548_v51 = vadd.f32 %v544_v63, %v435_v58  ;;  %v619_v9 = vadd.f32 %v606_v53, %v441_v10 }
 0x244   :  { %v436_v52 = vsel %vm434_vm6, %v427_v62, %v431_v49  ;;  %v442_v45 = vsel %vm434_vm6, %v431_v49, %v2091_v15  ;;  %v502_v15 = vmul.f32 %v488_v26, %v473_v48  ;;  %v506_v49 = vmul.f32 %v488_v26, %v477_v21 }
 0x245   :  { %v476_v2 = vadd.f32 %v2084_v19, %v442_v45  ;;  %v479_v18 = vadd.f32 %v2094_v54, %v436_v52  ;;  %v549_v57 = vadd.f32 %v2124_v8, %v442_v45  ;;  %v552_v27 = vadd.f32 %v544_v63, %v436_v52 }
 0x246   :  { %v580_v39 = vmul.f32 %v2165_v5, %v551_v41  ;;  %v545_v19 = vadd.f32 %v2124_v8, %v441_v10  ;;  %v623_v54 = vadd.f32 %v606_v53, %v442_v45  ;;  %v1388_v46 = vpack.c.bf16 %v506_v49, %v502_v15 }
 0x247   :  { %v2218_v62 = vpop.permute.xlu0 %859  ;;  %v505_v43 = vmul.f32 %v484_v16, %v476_v2  ;;  %v862_v20 = vpop.permute.xlu1 %861  ;;  %v504_v35 = vmul.f32 %v496_v14, %v475_v29  ;;  %v508_v32 = vmul.f32 %v496_v14, %v479_v18  ;;  %v578_v56 = vmul.f32 %v2175_v24, %v549_v57  ;;  %v413_v14 = vld [vmem:[%s2439_s7 + $0x18] sm:$0xf] }
 0x248   :  { %2506 = vst [vmem:[#allocation20_spill] sm:$0xff] %v2218_v62  ;;  %v626_v12 = vadd.f32 %v2145_v30, %v436_v52  ;;  %v575_v16 = vmul.f32 %v561_v28, %v546_v34  ;;  %v579_v48 = vmul.f32 %v561_v28, %v550_v33  ;;  %v622_v21 = vadd.f32 %v2145_v30, %v435_v58  ;;  %v415_v58 = vld [vmem:[%s2439_s7 + $0x20] sm:$0xf] }
 0x249   :  { %v1390_v25 = vpack.c.bf16 %v505_v43, %v501_v60  ;;  %1389 = vmatprep.subr.bf16.mxu0 %v1388_v46  ;;  %v1424_v26 = vpack.c.bf16 %v508_v32, %v504_v35  ;;  %v577_v8 = vmul.f32 %v569_v42, %v548_v51  ;;  %v581_v10 = vmul.f32 %v569_v42, %v552_v27  ;;  %v2507_v35 = vld [vmem:[#allocation27_spill] sm:$0xff] }
 0x24a   :  { %v574_v53 = vmul.f32 %v2175_v24, %v545_v19  ;;  %v1392_v41 = vpack.c.bf16 %v579_v48, %v575_v16  ;;  %v1426_v52 = vpack.c.bf16 %v507_v59, %v503_v17  ;;  %v653_v45 = vmul.f32 %v2191_v23, %v624_v47  ;;  %v414_v47 = vld [vmem:[%s2439_s7 + $0x1c] sm:$0xf]  ;;  %v2508_v32 = vld [vmem:[#allocation23_spill] sm:$0xff]  ;;  %s1638_s7 = smov [#allocation13]  }
 0x24b   :  { %v2224_v62 = vpop.permute.xlu0 %867  ;;  %v866_v63 = vpop.permute.xlu1 %865  ;;  %1391 = vmatpush1.bf16.msra.mxu0 %v1390_v25  ;;  %v576_v33 = vmul.f32 %v2165_v5, %v547_v3  ;;  %v621_v46 = vadd.f32 %v2142_v55, %v2158_v6  ;;  %1425 = vmatprep.subr.bf16.mxu1 %v1424_v26  ;;  %v1428_v34 = vpack.c.bf16 %v581_v10, %v577_v8  ;;  %s1349_s3 = sshll.u32 %s1638_s7, 4  ;;  %s1350_s3 = int_to_ptr.vmem [resolvable:$true] %s1349_s3 }
 0x24c   :  { %v649_v27 = vmul.f32 %v2191_v23, %v620_v22  ;;  %v652_v24 = vmul.f32 %v2182_v36, %v623_v54  ;;  %1393 = vmatprep.subr.bf16.mxu0 %v1392_v41  ;;  %1427 = vmatpush1.bf16.msra.mxu1 %v1426_v52  ;;  %v1394_v25 = vpack.c.bf16 %v578_v56, %v574_v53  ;;  %v2511_v41 = vld [vmem:[#allocation28_spill] sm:$0xff]  ;;  %s1585_s26 = scalar_lea.vmem %s1350_s3, 256  ;;  %p1590_p10 = scmp.lt.s32.totalorder %s1350_s3, %s1350_s3 }
 0x24d   :  { %v655_v17 = vmul.f32 %v2196_v0, %v626_v12  ;;  %v2244_v3 = vrot.slane %v413_v14, %v1845_v11  ;;  %1429 = vmatprep.subr.bf16.mxu1 %v1428_v34  ;;  %v2247_v5 = vrot.slane %v413_v14, %v2503_v40  ;;  %v651_v28 = vmul.f32 %v2196_v0, %v622_v21  ;;  %p1586_p9 = scmp.ne.s32.totalorder %s1350_s3, %s1585_s26  ;;  %p1591_p11 = scmp.lt.s32.totalorder %s1585_s26, %s1585_s26 }
 0x24e   :  { %v1396_v23 = vpack.c.bf16 %v653_v45, %v649_v27  ;;  %v654_v55 = vmul.f32 %v2168_v50, %v625_v1  ;;  %v648_v30 = vmul.f32 %v2182_v36, %v619_v9  ;;  %v2255_v12 = vsel %vm873_vm9, %v2205_v38, %v862_v20 }
 0x24f   :  { %v2237_v42 = vpop.permute.xlu0 %958  ;;  %v870_v22 = vpop.permute.xlu1 %869  ;;  %1395 = vmatpush1.bf16.msra.mxu0 %v1394_v25  ;;  %v1430_v6 = vpack.c.bf16 %v580_v39, %v576_v33  ;;  %v2262_v29 = vsel %vm873_vm9, %v862_v20, %v866_v63  ;;  %v1432_v0 = vpack.c.bf16 %v655_v17, %v651_v28  ;;  %v2265_v1 = vrot.slane %v414_v47, %v1845_v11  ;;  %v2513_v45 = vld [vmem:[#allocation20_spill] sm:$0xff]  ;;  %p1592_p12 = por %p1591_p11, %p1590_p10 }
 0x250   :  { %1397 = vmatprep.subr.bf16.mxu0 %v1396_v23  ;;  %v2268_v9 = vrot.slane %v414_v47, %v2503_v40  ;;  %v650_v36 = vmul.f32 %v2168_v50, %v621_v46  ;;  %v2273_v39 = vsel %vm873_vm9, %v866_v63, %v870_v22  ;;  %v2278_v2 = vsel %vm873_vm9, %v870_v22, %v2205_v38  ;;  %v2515_v25 = vld [vmem:[#allocation24_spill] sm:$0xff] }
 0x251   :  { %1431 = vmatpush1.bf16.msra.mxu1 %v1430_v6  ;;  %v1398_v59 = vpack.c.bf16 %v652_v24, %v648_v30  ;;  %v911_v60 = vadd.f32 %v2148_v13, %v2255_v12  ;;  %v2283_v57 = vrot.slane %v415_v58, %v1845_v11  ;;  %v927_v50 = vrot.slane %v413_v14, %v2504_v61  ;;  %v2514_v24 = vld [vmem:[#allocation26_spill] sm:$0xff]  ;;  %v2517_v28 = vld [vmem:[#allocation32_spill] sm:$0xff]  ;;  %p1593_p13 = pnand %p1592_p12, %p1586_p9 }
 0x252   :  { %1433 = vmatprep.subr.bf16.mxu1 %v1432_v0  ;;  %v935_v43 = vrot.slane %v413_v14, %v2505_v4  ;;  %v912_v15 = vadd.f32 %v2154_v44, %v2262_v29  ;;  %v1434_v20 = vpack.c.bf16 %v654_v55, %v650_v36  ;;  %v913_v19 = vadd.f32 %v2161_v37, %v2273_v39  ;;  %v2510_v14 = vld [vmem:[#allocation30_spill] sm:$0xff]  ;;  %v2518_v55 = vld [vmem:[#allocation31_spill] sm:$0xff]  ;;  %v2520_v36 = vld [vmem:[#allocation29_spill] sm:$0xff] }
 0x253   :  { %v963_v18 = vpop.permute.xlu0 %962  ;;  %v957_v51 = vpop.permute.xlu1 %956  ;;  %1399 = vmatpush1.bf16.msra.mxu0 %v1398_v59  ;;  %v914_v54 = vadd.f32 %v2151_v31, %v2278_v2  ;;  %v2509_v56 = vpack.c.bf16 %v2507_v35, %v2508_v32  ;;  %v2303_v16 = vrot.slane %v415_v58, %v2503_v40  ;;  %v1008_v48 = vrot.slane %v414_v47, %v2505_v4 }
 0x254   :  { %v966_v38 = vsel %vm873_vm9, %v957_v51, %v2237_v42  ;;  %v967_v49 = vsel %vm873_vm9, %v963_v18, %v957_v51  ;;  %v1000_v8 = vrot.slane %v414_v47, %v2504_v61  ;;  %v2310_v10 = vrot.slane %v415_v58, %v2504_v61 }
 0x255   :  { %1401 = vmatprep.subr.bf16.mxu0 %v2509_v56  ;;  %v971_v21 = vrot.slane %v966_v38, %v1845_v11  ;;  %v983_v26 = vrot.slane %v967_v49, %v1845_v11  ;;  %1435 = vmatpush1.bf16.msra.mxu1 %v1434_v20  ;;  %v2313_v53 = vmul.f32 %v2244_v3, %v911_v60  ;;  %v2523_v38 = vld [vmem:[#allocation34_spill] sm:$0xff]  ;;  %v2524_v49 = vld [vmem:[#allocation33_spill] sm:$0xff] }
 0x256   :  { %v2512_v40 = vpack.c.bf16 %v2510_v14, %v2511_v41  ;;  %v2327_v61 = vrot.slane %v415_v58, %v2505_v4  ;;  %v2516_v17 = vpack.c.bf16 %v2514_v24, %v2515_v25  ;;  %v941_v22 = vmul.f32 %v927_v50, %v912_v15 }
 0x257   :  { %v864_v63 = vpop.permute.xlu0 %863  ;;  %v961_v46 = vpop.permute.xlu1 %960  ;;  %v2338_v23 = vmul.f32 %v2247_v5, %v913_v19  ;;  %v943_v30 = vmul.f32 %v935_v43, %v914_v54  ;;  %v984_v6 = vadd.f32 %v971_v21, %v2255_v12  ;;  %v987_v58 = vadd.f32 %v983_v26, %v2278_v2 }
 0x258   :  { %1437 = vmatprep.subr.bf16.mxu1 %v2512_v40  ;;  %v2321_v52 = vsel %vm873_vm9, %v864_v63, %v2224_v62  ;;  %v879_v33 = vsel %vm873_vm9, %v2513_v45, %v864_v63  ;;  %1403 = vmatpush1.bf16.msra.mxu0 %v2516_v17  ;;  %v964_v47 = vsel %vm873_vm9, %v961_v46, %v963_v18  ;;  %v2521_v18 = vld [vmem:[#allocation25_spill] sm:$0xff]  ;;  %v2527_v63 = vld [vmem:[#allocation35_spill] sm:$0xff] }
 0x259   :  { %v915_v34 = vadd.f32 %v2148_v13, %v879_v33  ;;  %v916_v27 = vadd.f32 %v2154_v44, %v2321_v52  ;;  %v965_v4 = vsel %vm873_vm9, %v2237_v42, %v961_v46  ;;  %v979_v13 = vrot.slane %v964_v47, %v1845_v11  ;;  %v2529_v46 = vld [vmem:[#allocation40_spill] sm:$0xff]  ;;  %v2533_v17 = vld [vmem:[#allocation37_spill] sm:$0xff] }
 0x25a   :  { %v2519_v44 = vpack.c.bf16 %v2517_v28, %v2518_v55  ;;  %v975_v0 = vrot.slane %v965_v4, %v1845_v11  ;;  %v2522_v59 = vpack.c.bf16 %v2520_v36, %v2521_v18  ;;  %v988_v15 = vadd.f32 %v971_v21, %v879_v33  ;;  %v2526_v21 = vld [vmem:[#allocation36_spill] sm:$0xff] }
 0x25b   :  { %v872_v60 = vpop.permute.xlu0 %871  ;;  %v945_v51 = vmul.f32 %v927_v50, %v916_v27  ;;  %v944_v42 = vmul.f32 %v2244_v3, %v915_v34  ;;  %v2525_v20 = vpack.c.bf16 %v2523_v38, %v2524_v49  ;;  %v1030_v35 = vpop.permute.xlu1 %1029  ;;  %v2528_v14 = vpack.c.bf16 %v2526_v21, %v2527_v63  ;;  %v2530_v34 = vld [vmem:[#allocation39_spill] sm:$0xff] }
 0x25c   :  { %1405 = vmatprep.subr.bf16.mxu0 %v2519_v44  ;;  %1439 = vmatpush1.bf16.msra.mxu1 %v2522_v59  ;;  %v875_v19 = vsel %vm873_vm9, %v2224_v62, %v872_v60  ;;  %v881_v54 = vsel %vm873_vm9, %v872_v60, %v2513_v45  ;;  %v985_v32 = vadd.f32 %v975_v0, %v2262_v29  ;;  %v2538_v59 = vld [vmem:[#allocation42_spill] sm:$0xff] }
 0x25d   :  { %1441 = vmatprep.subr.bf16.mxu1 %v2525_v20  ;;  %v989_v50 = vadd.f32 %v975_v0, %v2321_v52  ;;  %v917_v3 = vadd.f32 %v2161_v37, %v875_v19  ;;  %v918_v56 = vadd.f32 %v2151_v31, %v881_v54  ;;  %1407 = vmatpush1.bf16.msra.mxu0 %v2528_v14  ;;  %v2532_v37 = vld [vmem:[#allocation38_spill] sm:$0xff] }
 0x25e   :  { %v986_v41 = vadd.f32 %v979_v13, %v2273_v39  ;;  %v990_v62 = vadd.f32 %v979_v13, %v875_v19  ;;  %v991_v40 = vadd.f32 %v983_v26, %v881_v54  ;;  %v2531_v45 = vpack.c.bf16 %v2529_v46, %v2530_v34  ;;  %v2535_v13 = vld [vmem:[#allocation44_spill] sm:$0xff]  ;;  %v2536_v26 = vld [vmem:[#allocation43_spill] sm:$0xff] }
 0x25f   :  { %v1412_v27 = vpack.c.bf16 %v945_v51, %v941_v22  ;;  %v1013_v24 = vmul.f32 %v2265_v1, %v984_v6  ;;  %v946_v25 = vmul.f32 %v2247_v5, %v917_v3  ;;  %v2534_v31 = vpack.c.bf16 %v2532_v37, %v2533_v17  ;;  %v1032_v47 = vpop.permute.xlu0 %1031  ;;  %v1034_v0 = vpop.permute.xlu1 %1033 }
 0x260   :  { %1409 = vmatprep.subr.bf16.mxu0 %v2531_v45  ;;  %v947_v4 = vmul.f32 %v935_v43, %v918_v56  ;;  %v1014_v28 = vmul.f32 %v1000_v8, %v985_v32  ;;  %v1017_v55 = vmul.f32 %v2265_v1, %v988_v15  ;;  %v2537_v44 = vpack.c.bf16 %v2535_v13, %v2536_v26  ;;  %v2539_v43 = vld [vmem:[#allocation41_spill] sm:$0xff]  ;;  %v2541_v32 = vld [vmem:[#allocation46_spill] sm:$0xff] }
 0x261   :  { %1443 = vmatpush1.bf16.msra.mxu1 %v2534_v31  ;;  %v1040_v22 = vsel %vm1037_vm10, %v1030_v35, %v1032_v47  ;;  %v1018_v6 = vmul.f32 %v1000_v8, %v989_v50  ;;  %v1016_v36 = vmul.f32 %v1008_v48, %v987_v58  ;;  %v1039_v18 = vsel %vm1037_vm10, %v1032_v47, %v1034_v0  ;;  %v2542_v50 = vld [vmem:[#allocation45_spill] sm:$0xff] }
 0x262   :  { %1445 = vmatprep.subr.bf16.mxu1 %v2537_v44  ;;  %v1045_v5 = vrot.slane %v1040_v22, %v1845_v11  ;;  %v2540_v60 = vpack.c.bf16 %v2538_v59, %v2539_v43  ;;  %v1448_v1 = vpack.c.bf16 %v947_v4, %v943_v30  ;;  %v1020_v51 = vmul.f32 %v1008_v48, %v991_v40 }
 0x263   :  { %v1015_v15 = vmul.f32 %v2268_v9, %v986_v41  ;;  %v1019_v38 = vmul.f32 %v2268_v9, %v990_v62  ;;  %v1049_v49 = vrot.slane %v1039_v18, %v1845_v11  ;;  %v1414_v8 = vpack.c.bf16 %v944_v42, %v2313_v53  ;;  %v1036_v56 = vpop.permute.xlu0 %1035 }
 0x264   :  { %1411 = vmatpush1.bf16.msra.mxu0 %v2540_v60  ;;  %v1058_v58 = vadd.f32 %v1045_v5, %v2255_v12  ;;  %v1062_v20 = vadd.f32 %v1045_v5, %v879_v33  ;;  %v2543_v3 = vpack.c.bf16 %v2541_v32, %v2542_v50  ;;  %v1416_v21 = vpack.c.bf16 %v1018_v6, %v1014_v28 }
 0x265   :  { %1413 = vmatprep.subr.bf16.mxu0 %v1412_v27  ;;  %v1450_v48 = vpack.c.bf16 %v946_v25, %v2338_v23  ;;  %v1059_v30 = vadd.f32 %v1049_v49, %v2262_v29  ;;  %v1063_v9 = vadd.f32 %v1049_v49, %v2321_v52  ;;  %v1038_v63 = vsel %vm1037_vm10, %v1034_v0, %v1036_v56 }
 0x266   :  { %1447 = vmatpush1.bf16.msra.mxu1 %v2543_v3  ;;  %v1041_v53 = vsel %vm1037_vm10, %v1036_v56, %v1030_v35  ;;  %v1053_v12 = vrot.slane %v1038_v63, %v1845_v11  ;;  %v1452_v42 = vpack.c.bf16 %v1020_v51, %v1016_v36  ;;  %v1418_v14 = vpack.c.bf16 %v1017_v55, %v1013_v24 }
 0x267   :  { %1449 = vmatprep.subr.bf16.mxu1 %v1448_v1  ;;  %v1057_v33 = vrot.slane %v1041_v53, %v1845_v11  ;;  %v1087_v23 = vmul.f32 %v2283_v57, %v1058_v58  ;;  %v1091_v29 = vmul.f32 %v2283_v57, %v1062_v20  ;;  %v1088_v52 = vmul.f32 %v2310_v10, %v1059_v30 }
 0x268   :  { %1415 = vmatpush1.bf16.msra.mxu0 %v1414_v8  ;;  %v1092_v41 = vmul.f32 %v2310_v10, %v1063_v9  ;;  %v1060_v7 = vadd.f32 %v1053_v12, %v2273_v39  ;;  %v1064_v62 = vadd.f32 %v1053_v12, %v875_v19  ;;  %v1454_v11 = vpack.c.bf16 %v1019_v38, %v1015_v15  ;;  %v2544_v19 = vld [vmem:[#allocation47_spill] sm:$0xff] }
 0x269   :  { %1417 = vmatprep.subr.bf16.mxu0 %v1416_v21  ;;  %v1061_v35 = vadd.f32 %v1057_v33, %v2278_v2  ;;  %v1065_v40 = vadd.f32 %v1057_v33, %v881_v54  ;;  %v1422_v39 = vpack.c.bf16 %v1091_v29, %v1087_v23 }
 0x26a   :  { %1451 = vmatpush1.bf16.msra.mxu1 %v1450_v48  ;;  %v1420_v46 = vpack.c.bf16 %v1092_v41, %v1088_v52  ;;  %v1089_v34 = vmul.f32 %v2303_v16, %v1060_v7  ;;  %v1093_v45 = vmul.f32 %v2303_v16, %v1064_v62 }
 0x26b   :  { %1453 = vmatprep.subr.bf16.mxu1 %v1452_v42  ;;  %v1090_v57 = vmul.f32 %v2327_v61, %v1061_v35  ;;  %v1094_v27 = vmul.f32 %v2327_v61, %v1065_v40 }
 0x26c   :  { %1419 = vmatpush1.bf16.msra.mxu0 %v1418_v14  ;;  %v1458_v2 = vpack.c.bf16 %v1093_v45, %v1089_v34 }
 0x26d   :  { %1421 = vmatprep.subr.bf16.mxu0 %v1420_v46  ;;  %v1456_v10 = vpack.c.bf16 %v1094_v27, %v1090_v57 }
 0x26e   :  { %1455 = vmatpush1.bf16.msra.mxu1 %v1454_v11 }
 0x26f   :  { %1457 = vmatprep.subr.bf16.mxu1 %v1456_v10 }
 0x270   :  { %1423 = vmatpush1.bf16.msra.mxu0 %v1422_v39  ;;  %v1180_v54 = vpop.permute.xlu1 %1179 }
 0x272   :  { %1459 = vmatpush1.bf16.msra.mxu1 %v1458_v2 }
 0x273   :  { %1252 = vmatmul.mubr.f32.vlgmr.msra.gmra.mrb[4].mxu0 %v2544_v19 }
 0x275   :  { %1323 = vmatmul.mubr.f32.vlgmr.msra.gmra.mrb[4].mxu1 %v2544_v19 }
 0x346   :  { %v1253_v24 = vpop.f32.mrb[4].mxu0 }
 0x347   :  { %v1254_v16 = vadd.f32 %v1253_v24, %v1180_v54  ;;  %v1255_v25 = vpop.f32.mrb[5].mxu0 }
 0x348   :  { %v1256_v37 = vadd.f32 %v1255_v25, %v1180_v54  ;;  %v1324_v17 = vpop.f32.mrb[4].mxu1 }
 0x349   :  { %v1329_v31 = vmax.f32 %v1254_v16, 0.0  ;;  %v1325_v61 = vadd.f32 %v1324_v17, %v1180_v54  ;;  %v1326_v47 = vpop.f32.mrb[5].mxu1 }
 0x34a   :  { %v1330_v4 = vmax.f32 %v1256_v37, 0.0  ;;  %v1327_v28 = vadd.f32 %v1326_v47, %v1180_v54 }
 0x34b   :  { %v1331_v55 = vmax.f32 %v1325_v61, 0.0 }
 0x34c   :  { %v1332_v13 = vmax.f32 %v1327_v28, 0.0  ;;  %v1337_v26 = vcombine.low %v1329_v31, %v1330_v4 }
 0x34e   :  { %v1338_v44 = vcombine.low %v1331_v55, %v1332_v13  ;;  %1341 = vst [vmem:[#allocation13] sm:$0xff] %v1337_v26 }
 0x350   :  { %1342 = vst [vmem:[#allocation13 + $0x8] sm:$0xff] %v1338_v44 }
 0x351   :  { %1596 = shalt.err (!%p1593_p13)
}
 0x352   :  { %s1597_s29 = scalar_lea.hbm %s2441_s9, 256 }
 0x353   :  { %p1598_p0 = scmp.ne.s32.totalorder %s2441_s9, %s1597_s29  ;;  %p1601_p1 = scmp.lt.u32.totalorder %s1597_s29, %s2441_s9 }
 0x355   :  { %p1603_p2 = pnand %p1601_p1, %p1598_p0 }
 0x357   :  { %1606 = shalt.err (!%p1603_p2)
}
 0x358   :  { %1352 = dma.vmem_to_hbm [thread:$0]  %s1350_s3, 256, %s2441_s9, [#allocation5]  }
 0x359   :  { %1617 = dma.done.wait [#allocation5], 256  }
 0x35a   :  { %1618 = vsyncadd [#allocation5], 4294967040 }
 0x35b   :  { %1356 = vsyncpa [#allocation4], 1 }
 0x35c   :  { %1357 = vsyncpa [#allocation8], 1 }
 0x35d   :  { %1358 = vsyncpa [#allocation12], 1 }
 0x35e   :  { %1359 = vsyncpa [#allocation5], 1 }
 0x35f   :  { %1360 = vsyncpa [#allocation6], 1 }

</bundles_post_ra>
